<compile_context>
chip_gen: v6e
topology: v6e:2x2x1
jax: 0.10.0
libtpu: 0.0.40
codegen_flags: <defaults>
</compile_context>

<pallas_src>
import functools
import math

import jax
import jax.numpy as jnp
from jax.experimental import pallas as pl
from jax.experimental.pallas import tpu as pltpu

# Cast MXU operands to this dtype.  float32 keeps numerical parity with the PyTorch
# reference; set to jnp.bfloat16 on v6e/v7x for ~2x MXU throughput (accumulation
# stays fp32 via preferred_element_type).
MXU_DTYPE = jnp.float32

VMEM_SPEC = pl.BlockSpec(memory_space=pltpu.MemorySpace.VMEM)


def _round_up(x, m):
    return (x + m - 1) // m * m


def _row_tiling(m, group=1, desired=256):
    """Row-tile size (multiple of 8 sublanes and of `group`) and padded row count."""
    base = (8 * group) // math.gcd(8, group)          # lcm(8, group)
    tm = max(base, _round_up(min(desired, m), base))
    return tm, _round_up(m, tm)


# --------------------------------------------------------------------------- #
# in-kernel math helpers
# --------------------------------------------------------------------------- #
def _mm(a, b):
    return jnp.dot(a.astype(MXU_DTYPE), b.astype(MXU_DTYPE),
                   preferred_element_type=jnp.float32)


def _qkt(q, k):
    # q @ k.T without materializing a transpose (contract the last dim of both).
    return jax.lax.dot_general(q.astype(MXU_DTYPE), k.astype(MXU_DTYPE),
                               (((1,), (1,)), ((), ())),
                               preferred_element_type=jnp.float32)


def _layernorm(x, g, b, eps=1e-5):          # torch LayerNorm default eps
    mu = jnp.mean(x, axis=-1, keepdims=True)
    xc = x - mu
    var = jnp.mean(xc * xc, axis=-1, keepdims=True)
    return xc * jax.lax.rsqrt(var + eps) * g + b


def _erf(x):
    # Abramowitz & Stegun 7.1.26, |err| < 1.5e-7 (fp32 level); known-good Mosaic ops.
    # TODO(synk): switch to a hardware (EUP) erf if Mosaic exposes lax.erf lowering.
    a1, a2, a3, a4, a5 = 0.254829592, -0.284496736, 1.421413741, -1.453152027, 1.061405429
    p = 0.3275911
    ax = jnp.abs(x)
    t = 1.0 / (1.0 + p * ax)
    poly = ((((a5 * t + a4) * t + a3) * t + a2) * t + a1) * t
    y = 1.0 - poly * jnp.exp(-ax * ax)
    return jnp.where(x < 0.0, -y, y)


def _gelu(x):                                # exact erf-based GELU (torch.nn.GELU())
    return 0.5 * x * (1.0 + _erf(x * (1.0 / math.sqrt(2.0))))


# --------------------------------------------------------------------------- #
# Pallas kernels
# --------------------------------------------------------------------------- #
def _linear_kernel(x_ref, w_ref, b_ref, o_ref):
    o_ref[...] = (_mm(x_ref[...], w_ref[...]) + b_ref[...]).astype(o_ref.dtype)


def _block_kernel(x_ref, bias_ref, g1_ref, c1_ref, wqkv_ref, bqkv_ref, wo_ref, bo_ref,
                  g2_ref, c2_ref, w1_ref, b1_ref, w2_ref, b2_ref, o_ref,
                  *, dim, heads, head_dim, scale):
    x = x_ref[...]                                        # (tm, D) fp32 residual rows
    bias = bias_ref[...]                                  # (tm, tm) additive attn mask

    # ---- pre-LN + fused QKV projection (single MXU matmul) ----
    xn = _layernorm(x, g1_ref[...], c1_ref[...])
    qkv = _mm(xn, wqkv_ref[...]) + bqkv_ref[...]          # (tm, 3D)

    # ---- multi-head attention over the L = batch axis.  Rows are laid out so every
    # B-row group shares one token position; `bias` keeps softmax inside the group.
    # The out-projection is accumulated per head, so no (tm, D) concat is built. ----
    attn = jnp.zeros_like(x)
    for h in range(heads):                                # static unroll (few heads)
        lo = h * head_dim
        qh = qkv[:, lo:lo + head_dim]
        kh = qkv[:, dim + lo:dim + lo + head_dim]
        vh = qkv[:, 2 * dim + lo:2 * dim + lo + head_dim]
        s = _qkt(qh, kh) * scale + bias                   # (tm, tm) scores on the MXU
        m = jnp.max(s, axis=-1, keepdims=True)
        e = jnp.exp(s - m)
        p = e * pl.reciprocal(jnp.sum(e, axis=-1, keepdims=True), approx=True)
        oh = _mm(p, vh)                                   # (tm, hd) on the MXU
        attn = attn + _mm(oh, wo_ref[lo:lo + head_dim, :])  # per-head out-proj slice

    # TODO(synk): attention / FF dropout treated as identity (p = 0.0 / inference).
    h1 = x + attn + bo_ref[...]                           # residual 1 (+ out-proj bias)

    # ---- pre-LN feed-forward: FF1 -> GELU -> FF2, fused with residual 2 ----
    hn = _layernorm(h1, g2_ref[...], c2_ref[...])
    f = _gelu(_mm(hn, w1_ref[...]) + b1_ref[...])
    f = _mm(f, w2_ref[...]) + b2_ref[...]
    o_ref[...] = (h1 + f).astype(o_ref.dtype)


def _head_kernel(x_ref, g_ref, c_ref, w_ref, b_ref, o_ref):
    xn = _layernorm(x_ref[...], g_ref[...], c_ref[...])
    o_ref[...] = (_mm(xn, w_ref[...]) + b_ref[...]).astype(o_ref.dtype)


# --------------------------------------------------------------------------- #
# wrappers
# --------------------------------------------------------------------------- #
def linear(x, w_t, b, desired_tm=256):
    m, k = x.shape
    n = w_t.shape[1]
    tm, mp = _row_tiling(m, group=1, desired=desired_tm)
    xp = jnp.pad(x, ((0, mp - m), (0, 0))) if mp != m else x
    out = pl.pallas_call(
        _linear_kernel,
        out_shape=jax.ShapeDtypeStruct((mp, n), jnp.float32),
        grid=(mp // tm,),
        in_specs=[pl.BlockSpec((tm, k), lambda i: (i, 0)),
                  pl.BlockSpec((k, n), lambda i: (0, 0)),
                  pl.BlockSpec((1, n), lambda i: (0, 0))],
        out_specs=pl.BlockSpec((tm, n), lambda i: (i, 0)),
        compiler_params=pltpu.CompilerParams(dimension_semantics=("parallel",)),
    )(xp, w_t, b)
    return out[:m]


def transformer_block(h2d, attn_bias, blk, *, dim, heads, head_dim, tm):
    mp = h2d.shape[0]
    mlp = blk["w1_t"].shape[1]
    row = pl.BlockSpec((tm, dim), lambda i: (i, 0))

    def rep(shape):       # parameter blocks: constant index -> DMA'd once, reused per tile
        return pl.BlockSpec(shape, lambda i: (0, 0))

    kernel = functools.partial(_block_kernel, dim=dim, heads=heads,
                               head_dim=head_dim, scale=1.0 / math.sqrt(head_dim))
    return pl.pallas_call(
        kernel,
        out_shape=jax.ShapeDtypeStruct((mp, dim), jnp.float32),
        grid=(mp // tm,),
        in_specs=[row,
                  rep((tm, tm)),
                  rep((1, dim)), rep((1, dim)),
                  rep((dim, 3 * dim)), rep((1, 3 * dim)),
                  rep((dim, dim)), rep((1, dim)),
                  rep((1, dim)), rep((1, dim)),
                  rep((dim, mlp)), rep((1, mlp)),
                  rep((mlp, dim)), rep((1, dim))],
        out_specs=row,
        input_output_aliases={0: 0},      # update residual stream in place (no extra HBM buffer)
        compiler_params=pltpu.CompilerParams(dimension_semantics=("parallel",)),
    )(h2d, attn_bias,
      blk["ln1_g"], blk["ln1_b"], blk["w_qkv_t"], blk["b_qkv"],
      blk["w_out_t"], blk["b_out"], blk["ln2_g"], blk["ln2_b"],
      blk["w1_t"], blk["b1"], blk["w2_t"], blk["b2"])


def mlp_head(cls_tokens, params):
    b = cls_tokens.shape[0]
    nc = params["head_w_t"].shape[1]
    return pl.pallas_call(
        _head_kernel,
        out_shape=jax.ShapeDtypeStruct((b, nc), jnp.float32),
        in_specs=[VMEM_SPEC] * 5,
        out_specs=VMEM_SPEC,
    )(cls_tokens, params["head_ln_g"], params["head_ln_b"],
      params["head_w_t"], params["head_b"])


# --------------------------------------------------------------------------- #
# ViT forward (matches the PyTorch module semantics)
# --------------------------------------------------------------------------- #
def vit_forward(x, params, cfg):
    b = x.shape[0]
    p = cfg["batch_size"]                  # module reuses config['batch_size'] as patch size
    dim, heads = cfg["dim"], cfg["heads"]
    hd = dim // heads
    c, img = cfg["channels"], cfg["image_size"]
    nh = nw = img // p
    n = nh * nw
    s = n + 1

    # ---- PatchEmbedding: Conv2d(k=stride=P) == patchify + linear projection ----
    patches = (x.reshape(b, c, nh, p, nw, p)
                 .transpose(0, 2, 4, 1, 3, 5)            # (B, nh, nw, C, P, P)
                 .reshape(b * n, c * p * p))
    proj = linear(patches, params["patch_w_t"], params["patch_b"]).reshape(b, n, dim)
    cls = jnp.broadcast_to(params["cls_token"], (b, 1, dim))
    tokens = jnp.concatenate([cls, proj], axis=1) + params["positions"][None]   # (B, S, D)

    # nn.MultiheadAttention (batch_first=False) on a (B, S, D) tensor attends over the
    # batch axis per token.  Lay the stream out s-major (row = s*B + b) so each
    # attention group is a contiguous block of B rows -> the fused block kernel can
    # tile over rows with a parallel grid.  One-time layout glue, done in plain JAX.
    m = s * b
    h2d = tokens.transpose(1, 0, 2).reshape(m, dim)

    # Pick the largest row tile that divides the padded stream (multiple of 8 sublanes
    # and of the group size B).  Big tiles amortize per-grid-step overhead and keep
    # DMAs HBM-roofline friendly; for real ViT sizes this stays well inside VMEM
    # (weights are block-constant so Pallas fetches them once).
    tm, mp = _row_tiling(m, group=b, desired=256)
    h2d = jnp.pad(h2d, ((0, mp - m), (0, 0)))            # padded rows form dead groups

    # Additive attention bias: 0 inside a B-row group, -1e30 across groups.  Identical
    # for every tile because tile boundaries are multiples of B.
    r = jnp.arange(tm)
    attn_bias = jnp.where((r[:, None] // b) == (r[None, :] // b),
                          0.0, -1e30).astype(jnp.float32)

    for blk in params["blocks"]:
        h2d = transformer_block(h2d, attn_bias, blk,
                                dim=dim, heads=heads, head_dim=hd, tm=tm)

    cls_tok = h2d[:b]                      # rows of token s = 0 (cls) for each batch element
    return mlp_head(cls_tok, params)


# --------------------------------------------------------------------------- #
# deterministic parameter construction (shapes follow the module's __init__)
# --------------------------------------------------------------------------- #
def init_params(key, cfg):
    dim, c, p = cfg["dim"], cfg["channels"], cfg["batch_size"]
    img, mlp, nc = cfg["image_size"], cfg["mlp_dim"], cfg["num_classes"]
    n = (img // p) ** 2
    ks = jax.random.split(key, 4 + cfg["depth"])

    def nrm(k, shape, s=0.02):
        return (s * jax.random.normal(k, shape)).astype(jnp.float32)

    params = dict(
        patch_w_t=nrm(ks[0], (c * p * p, dim), 0.05),     # Conv2d weight, flattened & transposed
        patch_b=jnp.zeros((1, dim), jnp.float32),
        cls_token=nrm(ks[1], (1, 1, dim), 1.0),           # torch.randn
        positions=nrm(ks[2], (n + 1, dim), 1.0),          # torch.randn
        head_ln_g=jnp.ones((1, dim), jnp.float32),
        head_ln_b=jnp.zeros((1, dim), jnp.float32),
        head_w_t=nrm(ks[3], (dim, nc), 0.05),
        head_b=jnp.zeros((1, nc), jnp.float32),
        blocks=[],
    )
    for d in range(cfg["depth"]):
        bk = jax.random.split(ks[4 + d], 4)
        params["blocks"].append(dict(
            ln1_g=jnp.ones((1, dim), jnp.float32),
            ln1_b=jnp.zeros((1, dim), jnp.float32),
            w_qkv_t=nrm(bk[0], (dim, 3 * dim), 0.05),     # in_proj_weight.T
            b_qkv=jnp.zeros((1, 3 * dim), jnp.float32),
            w_out_t=nrm(bk[1], (dim, dim), 0.05),         # out_proj.weight.T
            b_out=jnp.zeros((1, dim), jnp.float32),
            ln2_g=jnp.ones((1, dim), jnp.float32),
            ln2_b=jnp.zeros((1, dim), jnp.float32),
            w1_t=nrm(bk[2], (dim, mlp), 0.05),
            b1=jnp.zeros((1, mlp), jnp.float32),
            w2_t=nrm(bk[3], (mlp, dim), 0.05),
            b2=jnp.zeros((1, dim), jnp.float32),
        ))
    return params


if __name__ == "__main__":
    # config['batch_size'] is the Conv2d kernel/stride (patch size) per the module.
    cfg = dict(channels=4, dim=32, batch_size=4, image_size=16, mlp_dim=64,
               dropout=0.0, heads=4, depth=2, num_classes=8)
    key = jax.random.PRNGKey(0)
    kx, kp = jax.random.split(key)

    x = jax.random.normal(kx, (2, cfg["channels"], cfg["image_size"], cfg["image_size"]),
                          dtype=jnp.float32)   # NCHW, data batch = 2
    params = init_params(kp, cfg)

    fwd = jax.jit(lambda xx, pp: vit_forward(xx, pp, cfg))
    logits = fwd(x, params)
    jax.block_until_ready(logits)
    assert logits.shape == (2, cfg["num_classes"])
    assert bool(jnp.all(jnp.isfinite(logits)))
    print("KERNEL_OK")
</pallas_src>

<mosaic_0001>
module attributes {stable_mosaic.version = 11 : i64} {
  func.func @_linear_kernel(%arg0: i32, %arg1: memref<32x64xf32, #tpu.memory_space<vmem>>, %arg2: memref<64x32xf32, #tpu.memory_space<vmem>>, %arg3: memref<1x32xf32, #tpu.memory_space<vmem>>, %arg4: memref<32x32xf32, #tpu.memory_space<vmem>>) attributes {dimension_semantics = [#tpu.dimension_semantics<parallel>], iteration_bounds = array<i64: 1>, scalar_prefetch = 0 : i64, scratch_operands = 0 : i64, tpu.core_type = #tpu.core_type<tc>, window_params = [{transform_indices = @transform_0, window_bounds = array<i64: 32, 64>}, {pipeline_mode = #tpu.pipeline_mode<synchronous>, transform_indices = @transform_1, window_bounds = array<i64: 64, 32>}, {pipeline_mode = #tpu.pipeline_mode<synchronous>, transform_indices = @transform_2, window_bounds = array<i64: 1, 32>}, {transform_indices = @transform_3, window_bounds = array<i64: 32, 32>}]} {
    %c0 = arith.constant 0 : index
    %c0_0 = arith.constant 0 : index
    %0 = vector.load %arg1[%c0, %c0_0] : memref<32x64xf32, #tpu.memory_space<vmem>>, vector<32x64xf32>
    %c0_1 = arith.constant 0 : index
    %c0_2 = arith.constant 0 : index
    %1 = vector.load %arg2[%c0_1, %c0_2] : memref<64x32xf32, #tpu.memory_space<vmem>>, vector<64x32xf32>
    %cst = arith.constant dense<0.000000e+00> : vector<32x32xf32>
    %2 = tpu.matmul %0, %1, %cst {dimension_numbers = #tpu.dot_dimension_numbers<[1], [0], [0], [1], [0, 0, 1, 1], [], []>} : vector<32x64xf32>, vector<64x32xf32>, vector<32x32xf32> -> vector<32x32xf32>
    %c0_3 = arith.constant 0 : index
    %c0_4 = arith.constant 0 : index
    %3 = vector.load %arg3[%c0_3, %c0_4] : memref<1x32xf32, #tpu.memory_space<vmem>>, vector<1x32xf32>
    %4 = vector.broadcast %3 : vector<1x32xf32> to vector<32x32xf32>
    %5 = arith.addf %2, %4 : vector<32x32xf32>
    %c0_5 = arith.constant 0 : index
    %c0_6 = arith.constant 0 : index
    %6 = vector.load %arg4[%c0_5, %c0_6] : memref<32x32xf32, #tpu.memory_space<vmem>>, vector<32x32xf32>
    tpu.vector_store %arg4[%c0_5, %c0_6], %5 {strides = array<i32>} : memref<32x32xf32, #tpu.memory_space<vmem>>, vector<32x32xf32>,
    return
  }
  func.func @transform_0(%arg0: i32) -> (i32, i32) {
    %c0_i32 = arith.constant 0 : i32
    %c0_i32_0 = arith.constant 0 : i32
    return %arg0, %c0_i32 : i32, i32
  }
  func.func @transform_1(%arg0: i32) -> (i32, i32) {
    %c0_i32 = arith.constant 0 : i32
    %c0_i32_0 = arith.constant 0 : i32
    %c0_i32_1 = arith.constant 0 : i32
    return %c0_i32, %c0_i32_0 : i32, i32
  }
  func.func @transform_2(%arg0: i32) -> (i32, i32) {
    %c0_i32 = arith.constant 0 : i32
    %c0_i32_0 = arith.constant 0 : i32
    %c0_i32_1 = arith.constant 0 : i32
    return %c0_i32, %c0_i32_0 : i32, i32
  }
  func.func @transform_3(%arg0: i32) -> (i32, i32) {
    %c0_i32 = arith.constant 0 : i32
    %c0_i32_0 = arith.constant 0 : i32
    return %arg0, %c0_i32 : i32, i32
  }
}

module attributes {stable_mosaic.version = 11 : i64} {
  func.func @_block_kernel(%arg0: i32, %arg1: memref<40x32xf32, #tpu.memory_space<vmem>>, %arg2: memref<40x40xf32, #tpu.memory_space<vmem>>, %arg3: memref<1x32xf32, #tpu.memory_space<vmem>>, %arg4: memref<1x32xf32, #tpu.memory_space<vmem>>, %arg5: memref<32x96xf32, #tpu.memory_space<vmem>>, %arg6: memref<1x96xf32, #tpu.memory_space<vmem>>, %arg7: memref<32x32xf32, #tpu.memory_space<vmem>>, %arg8: memref<1x32xf32, #tpu.memory_space<vmem>>, %arg9: memref<1x32xf32, #tpu.memory_space<vmem>>, %arg10: memref<1x32xf32, #tpu.memory_space<vmem>>, %arg11: memref<32x64xf32, #tpu.memory_space<vmem>>, %arg12: memref<1x64xf32, #tpu.memory_space<vmem>>, %arg13: memref<64x32xf32, #tpu.memory_space<vmem>>, %arg14: memref<1x32xf32, #tpu.memory_space<vmem>>, %arg15: memref<40x32xf32, #tpu.memory_space<vmem>>) attributes {dimension_semantics = [#tpu.dimension_semantics<parallel>], iteration_bounds = array<i64: 1>, scalar_prefetch = 0 : i64, scratch_operands = 0 : i64, tpu.core_type = #tpu.core_type<tc>, window_params = [{transform_indices = @transform_0, window_bounds = array<i64: 40, 32>}, {pipeline_mode = #tpu.pipeline_mode<synchronous>, transform_indices = @transform_1, window_bounds = array<i64: 40, 40>}, {pipeline_mode = #tpu.pipeline_mode<synchronous>, transform_indices = @transform_2, window_bounds = array<i64: 1, 32>}, {pipeline_mode = #tpu.pipeline_mode<synchronous>, transform_indices = @transform_3, window_bounds = array<i64: 1, 32>}, {pipeline_mode = #tpu.pipeline_mode<synchronous>, transform_indices = @transform_4, window_bounds = array<i64: 32, 96>}, {pipeline_mode = #tpu.pipeline_mode<synchronous>, transform_indices = @transform_5, window_bounds = array<i64: 1, 96>}, {pipeline_mode = #tpu.pipeline_mode<synchronous>, transform_indices = @transform_6, window_bounds = array<i64: 32, 32>}, {pipeline_mode = #tpu.pipeline_mode<synchronous>, transform_indices = @transform_7, window_bounds = array<i64: 1, 32>}, {pipeline_mode = #tpu.pipeline_mode<synchronous>, transform_indices = @transform_8, window_bounds = array<i64: 1, 32>}, {pipeline_mode = #tpu.pipeline_mode<synchronous>, transform_indices = @transform_9, window_bounds = array<i64: 1, 32>}, {pipeline_mode = #tpu.pipeline_mode<synchronous>, transform_indices = @transform_10, window_bounds = array<i64: 32, 64>}, {pipeline_mode = #tpu.pipeline_mode<synchronous>, transform_indices = @transform_11, window_bounds = array<i64: 1, 64>}, {pipeline_mode = #tpu.pipeline_mode<synchronous>, transform_indices = @transform_12, window_bounds = array<i64: 64, 32>}, {pipeline_mode = #tpu.pipeline_mode<synchronous>, transform_indices = @transform_13, window_bounds = array<i64: 1, 32>}, {transform_indices = @transform_14, window_bounds = array<i64: 40, 32>}]} {
    %c0 = arith.constant 0 : index
    %c0_0 = arith.constant 0 : index
    %0 = vector.load %arg1[%c0, %c0_0] : memref<40x32xf32, #tpu.memory_space<vmem>>, vector<40x32xf32>
    %c0_1 = arith.constant 0 : index
    %c0_2 = arith.constant 0 : index
    %1 = vector.load %arg2[%c0_1, %c0_2] : memref<40x40xf32, #tpu.memory_space<vmem>>, vector<40x40xf32>
    %c0_3 = arith.constant 0 : index
    %c0_4 = arith.constant 0 : index
    %2 = vector.load %arg3[%c0_3, %c0_4] : memref<1x32xf32, #tpu.memory_space<vmem>>, vector<1x32xf32>
    %c0_5 = arith.constant 0 : index
    %c0_6 = arith.constant 0 : index
    %3 = vector.load %arg4[%c0_5, %c0_6] : memref<1x32xf32, #tpu.memory_space<vmem>>, vector<1x32xf32>
    %cst = arith.constant dense<0.000000e+00> : vector<40xf32>
    %4 = vector.multi_reduction <add>, %0, %cst [1] : vector<40x32xf32> to vector<40xf32>
    %5 = vector.shape_cast %4 : vector<40xf32> to vector<40x1xf32>
    %cst_7 = arith.constant 3.200000e+01 : f32
    %6 = vector.broadcast %cst_7 : f32 to vector<40x1xf32>
    %7 = arith.divf %5, %6 : vector<40x1xf32>
    %8 = vector.broadcast %7 : vector<40x1xf32> to vector<40x32xf32>
    %9 = arith.subf %0, %8 : vector<40x32xf32>
    %10 = arith.mulf %9, %9 : vector<40x32xf32>
    %cst_8 = arith.constant dense<0.000000e+00> : vector<40xf32>
    %11 = vector.multi_reduction <add>, %10, %cst_8 [1] : vector<40x32xf32> to vector<40xf32>
    %12 = vector.shape_cast %11 : vector<40xf32> to vector<40x1xf32>
    %cst_9 = arith.constant 3.200000e+01 : f32
    %13 = vector.broadcast %cst_9 : f32 to vector<40x1xf32>
    %14 = arith.divf %12, %13 : vector<40x1xf32>
    %cst_10 = arith.constant 9.99999974E-6 : f32
    %15 = vector.broadcast %cst_10 : f32 to vector<40x1xf32>
    %16 = arith.addf %14, %15 : vector<40x1xf32>
    %17 = math.rsqrt %16 : vector<40x1xf32>
    %18 = vector.broadcast %17 : vector<40x1xf32> to vector<40x32xf32>
    %19 = arith.mulf %9, %18 : vector<40x32xf32>
    %20 = vector.broadcast %2 : vector<1x32xf32> to vector<40x32xf32>
    %21 = arith.mulf %19, %20 : vector<40x32xf32>
    %22 = vector.broadcast %3 : vector<1x32xf32> to vector<40x32xf32>
    %23 = arith.addf %21, %22 : vector<40x32xf32>
    %c0_11 = arith.constant 0 : index
    %c0_12 = arith.constant 0 : index
    %24 = vector.load %arg5[%c0_11, %c0_12] : memref<32x96xf32, #tpu.memory_space<vmem>>, vector<32x96xf32>
    %cst_13 = arith.constant dense<0.000000e+00> : vector<40x96xf32>
    %25 = tpu.matmul %23, %24, %cst_13 {dimension_numbers = #tpu.dot_dimension_numbers<[1], [0], [0], [1], [0, 0, 1, 1], [], []>} : vector<40x32xf32>, vector<32x96xf32>, vector<40x96xf32> -> vector<40x96xf32>
    %c0_14 = arith.constant 0 : index
    %c0_15 = arith.constant 0 : index
    %26 = vector.load %arg6[%c0_14, %c0_15] : memref<1x96xf32, #tpu.memory_space<vmem>>, vector<1x96xf32>
    %27 = vector.broadcast %26 : vector<1x96xf32> to vector<40x96xf32>
    %28 = arith.addf %25, %27 : vector<40x96xf32>
    %cst_16 = arith.constant 0.000000e+00 : f32
    %29 = vector.broadcast %cst_16 : f32 to vector<40x32xf32>
    %30 = vector.extract_strided_slice %28 {offsets = [0, 0], sizes = [40, 8], strides = [1, 1]} : vector<40x96xf32> to vector<40x8xf32>
    %31 = vector.extract_strided_slice %28 {offsets = [0, 32], sizes = [40, 8], strides = [1, 1]} : vector<40x96xf32> to vector<40x8xf32>
    %32 = vector.extract_strided_slice %28 {offsets = [0, 64], sizes = [40, 8], strides = [1, 1]} : vector<40x96xf32> to vector<40x8xf32>
    %cst_17 = arith.constant dense<0.000000e+00> : vector<40x40xf32>
    %33 = tpu.matmul %30, %31, %cst_17 {dimension_numbers = #tpu.dot_dimension_numbers<[1], [1], [0], [0], [0, 0, 1, 0], [], []>} : vector<40x8xf32>, vector<40x8xf32>, vector<40x40xf32> -> vector<40x40xf32>
    %cst_18 = arith.constant 0.353553385 : f32
    %34 = vector.broadcast %cst_18 : f32 to vector<40x40xf32>
    %35 = arith.mulf %33, %34 : vector<40x40xf32>
    %36 = arith.addf %35, %1 : vector<40x40xf32>
    %cst_19 = arith.constant dense<0xFF800000> : vector<40xf32>
    %37 = vector.multi_reduction <maximumf>, %36, %cst_19 [1] : vector<40x40xf32> to vector<40xf32>
    %38 = vector.shape_cast %37 : vector<40xf32> to vector<40x1xf32>
    %39 = vector.broadcast %38 : vector<40x1xf32> to vector<40x40xf32>
    %40 = arith.subf %36, %39 : vector<40x40xf32>
    %41 = math.exp %40 : vector<40x40xf32>
    %cst_20 = arith.constant dense<0.000000e+00> : vector<40xf32>
    %42 = vector.multi_reduction <add>, %41, %cst_20 [1] : vector<40x40xf32> to vector<40xf32>
    %43 = vector.shape_cast %42 : vector<40xf32> to vector<40x1xf32>
    %44 = tpu.reciprocal %43 {approx = true} : vector<40x1xf32> -> vector<40x1xf32>
    %45 = vector.broadcast %44 : vector<40x1xf32> to vector<40x40xf32>
    %46 = arith.mulf %41, %45 : vector<40x40xf32>
    %cst_21 = arith.constant dense<0.000000e+00> : vector<40x8xf32>
    %47 = tpu.matmul %46, %32, %cst_21 {dimension_numbers = #tpu.dot_dimension_numbers<[1], [0], [0], [1], [0, 0, 1, 1], [], []>} : vector<40x40xf32>, vector<40x8xf32>, vector<40x8xf32> -> vector<40x8xf32>
    %c0_22 = arith.constant 0 : index
    %c0_23 = arith.constant 0 : index
    %48 = vector.load %arg7[%c0_22, %c0_23] : memref<32x32xf32, #tpu.memory_space<vmem>>, vector<8x32xf32>
    %cst_24 = arith.constant dense<0.000000e+00> : vector<40x32xf32>
    %49 = tpu.matmul %47, %48, %cst_24 {dimension_numbers = #tpu.dot_dimension_numbers<[1], [0], [0], [1], [0, 0, 1, 1], [], []>} : vector<40x8xf32>, vector<8x32xf32>, vector<40x32xf32> -> vector<40x32xf32>
    %50 = arith.addf %29, %49 : vector<40x32xf32>
    %51 = vector.extract_strided_slice %28 {offsets = [0, 8], sizes = [40, 8], strides = [1, 1]} : vector<40x96xf32> to vector<40x8xf32>
    %52 = vector.extract_strided_slice %28 {offsets = [0, 40], sizes = [40, 8], strides = [1, 1]} : vector<40x96xf32> to vector<40x8xf32>
    %53 = vector.extract_strided_slice %28 {offsets = [0, 72], sizes = [40, 8], strides = [1, 1]} : vector<40x96xf32> to vector<40x8xf32>
    %cst_25 = arith.constant dense<0.000000e+00> : vector<40x40xf32>
    %54 = tpu.matmul %51, %52, %cst_25 {dimension_numbers = #tpu.dot_dimension_numbers<[1], [1], [0], [0], [0, 0, 1, 0], [], []>} : vector<40x8xf32>, vector<40x8xf32>, vector<40x40xf32> -> vector<40x40xf32>
    %cst_26 = arith.constant 0.353553385 : f32
    %55 = vector.broadcast %cst_26 : f32 to vector<40x40xf32>
    %56 = arith.mulf %54, %55 : vector<40x40xf32>
    %57 = arith.addf %56, %1 : vector<40x40xf32>
    %cst_27 = arith.constant dense<0xFF800000> : vector<40xf32>
    %58 = vector.multi_reduction <maximumf>, %57, %cst_27 [1] : vector<40x40xf32> to vector<40xf32>
    %59 = vector.shape_cast %58 : vector<40xf32> to vector<40x1xf32>
    %60 = vector.broadcast %59 : vector<40x1xf32> to vector<40x40xf32>
    %61 = arith.subf %57, %60 : vector<40x40xf32>
    %62 = math.exp %61 : vector<40x40xf32>
    %cst_28 = arith.constant dense<0.000000e+00> : vector<40xf32>
    %63 = vector.multi_reduction <add>, %62, %cst_28 [1] : vector<40x40xf32> to vector<40xf32>
    %64 = vector.shape_cast %63 : vector<40xf32> to vector<40x1xf32>
    %65 = tpu.reciprocal %64 {approx = true} : vector<40x1xf32> -> vector<40x1xf32>
    %66 = vector.broadcast %65 : vector<40x1xf32> to vector<40x40xf32>
    %67 = arith.mulf %62, %66 : vector<40x40xf32>
    %cst_29 = arith.constant dense<0.000000e+00> : vector<40x8xf32>
    %68 = tpu.matmul %67, %53, %cst_29 {dimension_numbers = #tpu.dot_dimension_numbers<[1], [0], [0], [1], [0, 0, 1, 1], [], []>} : vector<40x40xf32>, vector<40x8xf32>, vector<40x8xf32> -> vector<40x8xf32>
    %c8 = arith.constant 8 : index
    %c0_30 = arith.constant 0 : index
    %69 = vector.load %arg7[%c8, %c0_30] : memref<32x32xf32, #tpu.memory_space<vmem>>, vector<8x32xf32>
    %cst_31 = arith.constant dense<0.000000e+00> : vector<40x32xf32>
    %70 = tpu.matmul %68, %69, %cst_31 {dimension_numbers = #tpu.dot_dimension_numbers<[1], [0], [0], [1], [0, 0, 1, 1], [], []>} : vector<40x8xf32>, vector<8x32xf32>, vector<40x32xf32> -> vector<40x32xf32>
    %71 = arith.addf %50, %70 : vector<40x32xf32>
    %72 = vector.extract_strided_slice %28 {offsets = [0, 16], sizes = [40, 8], strides = [1, 1]} : vector<40x96xf32> to vector<40x8xf32>
    %73 = vector.extract_strided_slice %28 {offsets = [0, 48], sizes = [40, 8], strides = [1, 1]} : vector<40x96xf32> to vector<40x8xf32>
    %74 = vector.extract_strided_slice %28 {offsets = [0, 80], sizes = [40, 8], strides = [1, 1]} : vector<40x96xf32> to vector<40x8xf32>
    %cst_32 = arith.constant dense<0.000000e+00> : vector<40x40xf32>
    %75 = tpu.matmul %72, %73, %cst_32 {dimension_numbers = #tpu.dot_dimension_numbers<[1], [1], [0], [0], [0, 0, 1, 0], [], []>} : vector<40x8xf32>, vector<40x8xf32>, vector<40x40xf32> -> vector<40x40xf32>
    %cst_33 = arith.constant 0.353553385 : f32
    %76 = vector.broadcast %cst_33 : f32 to vector<40x40xf32>
    %77 = arith.mulf %75, %76 : vector<40x40xf32>
    %78 = arith.addf %77, %1 : vector<40x40xf32>
    %cst_34 = arith.constant dense<0xFF800000> : vector<40xf32>
    %79 = vector.multi_reduction <maximumf>, %78, %cst_34 [1] : vector<40x40xf32> to vector<40xf32>
    %80 = vector.shape_cast %79 : vector<40xf32> to vector<40x1xf32>
    %81 = vector.broadcast %80 : vector<40x1xf32> to vector<40x40xf32>
    %82 = arith.subf %78, %81 : vector<40x40xf32>
    %83 = math.exp %82 : vector<40x40xf32>
    %cst_35 = arith.constant dense<0.000000e+00> : vector<40xf32>
    %84 = vector.multi_reduction <add>, %83, %cst_35 [1] : vector<40x40xf32> to vector<40xf32>
    %85 = vector.shape_cast %84 : vector<40xf32> to vector<40x1xf32>
    %86 = tpu.reciprocal %85 {approx = true} : vector<40x1xf32> -> vector<40x1xf32>
    %87 = vector.broadcast %86 : vector<40x1xf32> to vector<40x40xf32>
    %88 = arith.mulf %83, %87 : vector<40x40xf32>
    %cst_36 = arith.constant dense<0.000000e+00> : vector<40x8xf32>
    %89 = tpu.matmul %88, %74, %cst_36 {dimension_numbers = #tpu.dot_dimension_numbers<[1], [0], [0], [1], [0, 0, 1, 1], [], []>} : vector<40x40xf32>, vector<40x8xf32>, vector<40x8xf32> -> vector<40x8xf32>
    %c16 = arith.constant 16 : index
    %c0_37 = arith.constant 0 : index
    %90 = vector.load %arg7[%c16, %c0_37] : memref<32x32xf32, #tpu.memory_space<vmem>>, vector<8x32xf32>
    %cst_38 = arith.constant dense<0.000000e+00> : vector<40x32xf32>
    %91 = tpu.matmul %89, %90, %cst_38 {dimension_numbers = #tpu.dot_dimension_numbers<[1], [0], [0], [1], [0, 0, 1, 1], [], []>} : vector<40x8xf32>, vector<8x32xf32>, vector<40x32xf32> -> vector<40x32xf32>
    %92 = arith.addf %71, %91 : vector<40x32xf32>
    %93 = vector.extract_strided_slice %28 {offsets = [0, 24], sizes = [40, 8], strides = [1, 1]} : vector<40x96xf32> to vector<40x8xf32>
    %94 = vector.extract_strided_slice %28 {offsets = [0, 56], sizes = [40, 8], strides = [1, 1]} : vector<40x96xf32> to vector<40x8xf32>
    %95 = vector.extract_strided_slice %28 {offsets = [0, 88], sizes = [40, 8], strides = [1, 1]} : vector<40x96xf32> to vector<40x8xf32>
    %cst_39 = arith.constant dense<0.000000e+00> : vector<40x40xf32>
    %96 = tpu.matmul %93, %94, %cst_39 {dimension_numbers = #tpu.dot_dimension_numbers<[1], [1], [0], [0], [0, 0, 1, 0], [], []>} : vector<40x8xf32>, vector<40x8xf32>, vector<40x40xf32> -> vector<40x40xf32>
    %cst_40 = arith.constant 0.353553385 : f32
    %97 = vector.broadcast %cst_40 : f32 to vector<40x40xf32>
    %98 = arith.mulf %96, %97 : vector<40x40xf32>
    %99 = arith.addf %98, %1 : vector<40x40xf32>
    %cst_41 = arith.constant dense<0xFF800000> : vector<40xf32>
    %100 = vector.multi_reduction <maximumf>, %99, %cst_41 [1] : vector<40x40xf32> to vector<40xf32>
    %101 = vector.shape_cast %100 : vector<40xf32> to vector<40x1xf32>
    %102 = vector.broadcast %101 : vector<40x1xf32> to vector<40x40xf32>
    %103 = arith.subf %99, %102 : vector<40x40xf32>
    %104 = math.exp %103 : vector<40x40xf32>
    %cst_42 = arith.constant dense<0.000000e+00> : vector<40xf32>
    %105 = vector.multi_reduction <add>, %104, %cst_42 [1] : vector<40x40xf32> to vector<40xf32>
    %106 = vector.shape_cast %105 : vector<40xf32> to vector<40x1xf32>
    %107 = tpu.reciprocal %106 {approx = true} : vector<40x1xf32> -> vector<40x1xf32>
    %108 = vector.broadcast %107 : vector<40x1xf32> to vector<40x40xf32>
    %109 = arith.mulf %104, %108 : vector<40x40xf32>
    %cst_43 = arith.constant dense<0.000000e+00> : vector<40x8xf32>
    %110 = tpu.matmul %109, %95, %cst_43 {dimension_numbers = #tpu.dot_dimension_numbers<[1], [0], [0], [1], [0, 0, 1, 1], [], []>} : vector<40x40xf32>, vector<40x8xf32>, vector<40x8xf32> -> vector<40x8xf32>
    %c24 = arith.constant 24 : index
    %c0_44 = arith.constant 0 : index
    %111 = vector.load %arg7[%c24, %c0_44] : memref<32x32xf32, #tpu.memory_space<vmem>>, vector<8x32xf32>
    %cst_45 = arith.constant dense<0.000000e+00> : vector<40x32xf32>
    %112 = tpu.matmul %110, %111, %cst_45 {dimension_numbers = #tpu.dot_dimension_numbers<[1], [0], [0], [1], [0, 0, 1, 1], [], []>} : vector<40x8xf32>, vector<8x32xf32>, vector<40x32xf32> -> vector<40x32xf32>
    %113 = arith.addf %92, %112 : vector<40x32xf32>
    %114 = arith.addf %0, %113 : vector<40x32xf32>
    %c0_46 = arith.constant 0 : index
    %c0_47 = arith.constant 0 : index
    %115 = vector.load %arg8[%c0_46, %c0_47] : memref<1x32xf32, #tpu.memory_space<vmem>>, vector<1x32xf32>
    %116 = vector.broadcast %115 : vector<1x32xf32> to vector<40x32xf32>
    %117 = arith.addf %114, %116 : vector<40x32xf32>
    %c0_48 = arith.constant 0 : index
    %c0_49 = arith.constant 0 : index
    %118 = vector.load %arg9[%c0_48, %c0_49] : memref<1x32xf32, #tpu.memory_space<vmem>>, vector<1x32xf32>
    %c0_50 = arith.constant 0 : index
    %c0_51 = arith.constant 0 : index
    %119 = vector.load %arg10[%c0_50, %c0_51] : memref<1x32xf32, #tpu.memory_space<vmem>>, vector<1x32xf32>
    %cst_52 = arith.constant dense<0.000000e+00> : vector<40xf32>
    %120 = vector.multi_reduction <add>, %117, %cst_52 [1] : vector<40x32xf32> to vector<40xf32>
    %121 = vector.shape_cast %120 : vector<40xf32> to vector<40x1xf32>
    %cst_53 = arith.constant 3.200000e+01 : f32
    %122 = vector.broadcast %cst_53 : f32 to vector<40x1xf32>
    %123 = arith.divf %121, %122 : vector<40x1xf32>
    %124 = vector.broadcast %123 : vector<40x1xf32> to vector<40x32xf32>
    %125 = arith.subf %117, %124 : vector<40x32xf32>
    %126 = arith.mulf %125, %125 : vector<40x32xf32>
    %cst_54 = arith.constant dense<0.000000e+00> : vector<40xf32>
    %127 = vector.multi_reduction <add>, %126, %cst_54 [1] : vector<40x32xf32> to vector<40xf32>
    %128 = vector.shape_cast %127 : vector<40xf32> to vector<40x1xf32>
    %cst_55 = arith.constant 3.200000e+01 : f32
    %129 = vector.broadcast %cst_55 : f32 to vector<40x1xf32>
    %130 = arith.divf %128, %129 : vector<40x1xf32>
    %cst_56 = arith.constant 9.99999974E-6 : f32
    %131 = vector.broadcast %cst_56 : f32 to vector<40x1xf32>
    %132 = arith.addf %130, %131 : vector<40x1xf32>
    %133 = math.rsqrt %132 : vector<40x1xf32>
    %134 = vector.broadcast %133 : vector<40x1xf32> to vector<40x32xf32>
    %135 = arith.mulf %125, %134 : vector<40x32xf32>
    %136 = vector.broadcast %118 : vector<1x32xf32> to vector<40x32xf32>
    %137 = arith.mulf %135, %136 : vector<40x32xf32>
    %138 = vector.broadcast %119 : vector<1x32xf32> to vector<40x32xf32>
    %139 = arith.addf %137, %138 : vector<40x32xf32>
    %c0_57 = arith.constant 0 : index
    %c0_58 = arith.constant 0 : index
    %140 = vector.load %arg11[%c0_57, %c0_58] : memref<32x64xf32, #tpu.memory_space<vmem>>, vector<32x64xf32>
    %cst_59 = arith.constant dense<0.000000e+00> : vector<40x64xf32>
    %141 = tpu.matmul %139, %140, %cst_59 {dimension_numbers = #tpu.dot_dimension_numbers<[1], [0], [0], [1], [0, 0, 1, 1], [], []>} : vector<40x32xf32>, vector<32x64xf32>, vector<40x64xf32> -> vector<40x64xf32>
    %c0_60 = arith.constant 0 : index
    %c0_61 = arith.constant 0 : index
    %142 = vector.load %arg12[%c0_60, %c0_61] : memref<1x64xf32, #tpu.memory_space<vmem>>, vector<1x64xf32>
    %143 = vector.broadcast %142 : vector<1x64xf32> to vector<40x64xf32>
    %144 = arith.addf %141, %143 : vector<40x64xf32>
    %cst_62 = arith.constant 5.000000e-01 : f32
    %145 = vector.broadcast %cst_62 : f32 to vector<40x64xf32>
    %146 = arith.mulf %145, %144 : vector<40x64xf32>
    %cst_63 = arith.constant 0.707106769 : f32
    %147 = vector.broadcast %cst_63 : f32 to vector<40x64xf32>
    %148 = arith.mulf %144, %147 : vector<40x64xf32>
    %149 = math.absf %148 : vector<40x64xf32>
    %cst_64 = arith.constant 0.327591091 : f32
    %150 = vector.broadcast %cst_64 : f32 to vector<40x64xf32>
    %151 = arith.mulf %150, %149 : vector<40x64xf32>
    %cst_65 = arith.constant 1.000000e+00 : f32
    %152 = vector.broadcast %cst_65 : f32 to vector<40x64xf32>
    %153 = arith.addf %152, %151 : vector<40x64xf32>
    %cst_66 = arith.constant 1.000000e+00 : f32
    %154 = vector.broadcast %cst_66 : f32 to vector<40x64xf32>
    %155 = arith.divf %154, %153 : vector<40x64xf32>
    %cst_67 = arith.constant 1.06140542 : f32
    %156 = vector.broadcast %cst_67 : f32 to vector<40x64xf32>
    %157 = arith.mulf %156, %155 : vector<40x64xf32>
    %cst_68 = arith.constant -1.45315206 : f32
    %158 = vector.broadcast %cst_68 : f32 to vector<40x64xf32>
    %159 = arith.addf %157, %158 : vector<40x64xf32>
    %160 = arith.mulf %159, %155 : vector<40x64xf32>
    %cst_69 = arith.constant 1.42141378 : f32
    %161 = vector.broadcast %cst_69 : f32 to vector<40x64xf32>
    %162 = arith.addf %160, %161 : vector<40x64xf32>
    %163 = arith.mulf %162, %155 : vector<40x64xf32>
    %cst_70 = arith.constant -0.284496725 : f32
    %164 = vector.broadcast %cst_70 : f32 to vector<40x64xf32>
    %165 = arith.addf %163, %164 : vector<40x64xf32>
    %166 = arith.mulf %165, %155 : vector<40x64xf32>
    %cst_71 = arith.constant 0.254829586 : f32
    %167 = vector.broadcast %cst_71 : f32 to vector<40x64xf32>
    %168 = arith.addf %166, %167 : vector<40x64xf32>
    %169 = arith.mulf %168, %155 : vector<40x64xf32>
    %cst_72 = arith.constant 0.000000e+00 : f32
    %170 = vector.broadcast %cst_72 : f32 to vector<40x64xf32>
    %171 = arith.subf %170, %149 : vector<40x64xf32>
    %172 = arith.mulf %171, %149 : vector<40x64xf32>
    %173 = math.exp %172 : vector<40x64xf32>
    %174 = arith.mulf %169, %173 : vector<40x64xf32>
    %cst_73 = arith.constant 1.000000e+00 : f32
    %175 = vector.broadcast %cst_73 : f32 to vector<40x64xf32>
    %176 = arith.subf %175, %174 : vector<40x64xf32>
    %cst_74 = arith.constant 0.000000e+00 : f32
    %177 = vector.broadcast %cst_74 : f32 to vector<40x64xf32>
    %178 = arith.cmpf olt, %148, %177 : vector<40x64xf32>
    %cst_75 = arith.constant 0.000000e+00 : f32
    %179 = vector.broadcast %cst_75 : f32 to vector<40x64xf32>
    %180 = arith.subf %179, %176 : vector<40x64xf32>
    %181 = arith.select %178, %180, %176 : vector<40x64xi1>, vector<40x64xf32>
    %cst_76 = arith.constant 1.000000e+00 : f32
    %182 = vector.broadcast %cst_76 : f32 to vector<40x64xf32>
    %183 = arith.addf %182, %181 : vector<40x64xf32>
    %184 = arith.mulf %146, %183 : vector<40x64xf32>
    %c0_77 = arith.constant 0 : index
    %c0_78 = arith.constant 0 : index
    %185 = vector.load %arg13[%c0_77, %c0_78] : memref<64x32xf32, #tpu.memory_space<vmem>>, vector<64x32xf32>
    %cst_79 = arith.constant dense<0.000000e+00> : vector<40x32xf32>
    %186 = tpu.matmul %184, %185, %cst_79 {dimension_numbers = #tpu.dot_dimension_numbers<[1], [0], [0], [1], [0, 0, 1, 1], [], []>} : vector<40x64xf32>, vector<64x32xf32>, vector<40x32xf32> -> vector<40x32xf32>
    %c0_80 = arith.constant 0 : index
    %c0_81 = arith.constant 0 : index
    %187 = vector.load %arg14[%c0_80, %c0_81] : memref<1x32xf32, #tpu.memory_space<vmem>>, vector<1x32xf32>
    %188 = vector.broadcast %187 : vector<1x32xf32> to vector<40x32xf32>
    %189 = arith.addf %186, %188 : vector<40x32xf32>
    %190 = arith.addf %117, %189 : vector<40x32xf32>
    %c0_82 = arith.constant 0 : index
    %c0_83 = arith.constant 0 : index
    %191 = vector.load %arg15[%c0_82, %c0_83] : memref<40x32xf32, #tpu.memory_space<vmem>>, vector<40x32xf32>
    tpu.vector_store %arg15[%c0_82, %c0_83], %190 {strides = array<i32>} : memref<40x32xf32, #tpu.memory_space<vmem>>, vector<40x32xf32>,
    return
  }
  func.func @transform_0(%arg0: i32) -> (i32, i32) {
    %c0_i32 = arith.constant 0 : i32
    %c0_i32_0 = arith.constant 0 : i32
    return %arg0, %c0_i32 : i32, i32
  }
  func.func @transform_1(%arg0: i32) -> (i32, i32) {
    %c0_i32 = arith.constant 0 : i32
    %c0_i32_0 = arith.constant 0 : i32
    %c0_i32_1 = arith.constant 0 : i32
    return %c0_i32, %c0_i32_0 : i32, i32
  }
  func.func @transform_2(%arg0: i32) -> (i32, i32) {
    %c0_i32 = arith.constant 0 : i32
    %c0_i32_0 = arith.constant 0 : i32
    %c0_i32_1 = arith.constant 0 : i32
    return %c0_i32, %c0_i32_0 : i32, i32
  }
  func.func @transform_3(%arg0: i32) -> (i32, i32) {
    %c0_i32 = arith.constant 0 : i32
    %c0_i32_0 = arith.constant 0 : i32
    %c0_i32_1 = arith.constant 0 : i32
    return %c0_i32, %c0_i32_0 : i32, i32
  }
  func.func @transform_4(%arg0: i32) -> (i32, i32) {
    %c0_i32 = arith.constant 0 : i32
    %c0_i32_0 = arith.constant 0 : i32
    %c0_i32_1 = arith.constant 0 : i32
    return %c0_i32, %c0_i32_0 : i32, i32
  }
  func.func @transform_5(%arg0: i32) -> (i32, i32) {
    %c0_i32 = arith.constant 0 : i32
    %c0_i32_0 = arith.constant 0 : i32
    %c0_i32_1 = arith.constant 0 : i32
    return %c0_i32, %c0_i32_0 : i32, i32
  }
  func.func @transform_6(%arg0: i32) -> (i32, i32) {
    %c0_i32 = arith.constant 0 : i32
    %c0_i32_0 = arith.constant 0 : i32
    %c0_i32_1 = arith.constant 0 : i32
    return %c0_i32, %c0_i32_0 : i32, i32
  }
  func.func @transform_7(%arg0: i32) -> (i32, i32) {
    %c0_i32 = arith.constant 0 : i32
    %c0_i32_0 = arith.constant 0 : i32
    %c0_i32_1 = arith.constant 0 : i32
    return %c0_i32, %c0_i32_0 : i32, i32
  }
  func.func @transform_8(%arg0: i32) -> (i32, i32) {
    %c0_i32 = arith.constant 0 : i32
    %c0_i32_0 = arith.constant 0 : i32
    %c0_i32_1 = arith.constant 0 : i32
    return %c0_i32, %c0_i32_0 : i32, i32
  }
  func.func @transform_9(%arg0: i32) -> (i32, i32) {
    %c0_i32 = arith.constant 0 : i32
    %c0_i32_0 = arith.constant 0 : i32
    %c0_i32_1 = arith.constant 0 : i32
    return %c0_i32, %c0_i32_0 : i32, i32
  }
  func.func @transform_10(%arg0: i32) -> (i32, i32) {
    %c0_i32 = arith.constant 0 : i32
    %c0_i32_0 = arith.constant 0 : i32
    %c0_i32_1 = arith.constant 0 : i32
    return %c0_i32, %c0_i32_0 : i32, i32
  }
  func.func @transform_11(%arg0: i32) -> (i32, i32) {
    %c0_i32 = arith.constant 0 : i32
    %c0_i32_0 = arith.constant 0 : i32
    %c0_i32_1 = arith.constant 0 : i32
    return %c0_i32, %c0_i32_0 : i32, i32
  }
  func.func @transform_12(%arg0: i32) -> (i32, i32) {
    %c0_i32 = arith.constant 0 : i32
    %c0_i32_0 = arith.constant 0 : i32
    %c0_i32_1 = arith.constant 0 : i32
    return %c0_i32, %c0_i32_0 : i32, i32
  }
  func.func @transform_13(%arg0: i32) -> (i32, i32) {
    %c0_i32 = arith.constant 0 : i32
    %c0_i32_0 = arith.constant 0 : i32
    %c0_i32_1 = arith.constant 0 : i32
    return %c0_i32, %c0_i32_0 : i32, i32
  }
  func.func @transform_14(%arg0: i32) -> (i32, i32) {
    %c0_i32 = arith.constant 0 : i32
    %c0_i32_0 = arith.constant 0 : i32
    return %arg0, %c0_i32 : i32, i32
  }
}

module attributes {stable_mosaic.version = 11 : i64} {
  func.func @_head_kernel(%arg0: memref<2x32xf32, #tpu.memory_space<vmem>>, %arg1: memref<1x32xf32, #tpu.memory_space<vmem>>, %arg2: memref<1x32xf32, #tpu.memory_space<vmem>>, %arg3: memref<32x8xf32, #tpu.memory_space<vmem>>, %arg4: memref<1x8xf32, #tpu.memory_space<vmem>>, %arg5: memref<2x8xf32, #tpu.memory_space<vmem>>) attributes {dimension_semantics = [], scalar_prefetch = 0 : i64, scratch_operands = 0 : i64, tpu.core_type = #tpu.core_type<tc>} {
    %c0 = arith.constant 0 : index
    %c0_0 = arith.constant 0 : index
    %0 = vector.load %arg0[%c0, %c0_0] : memref<2x32xf32, #tpu.memory_space<vmem>>, vector<2x32xf32>
    %c0_1 = arith.constant 0 : index
    %c0_2 = arith.constant 0 : index
    %1 = vector.load %arg1[%c0_1, %c0_2] : memref<1x32xf32, #tpu.memory_space<vmem>>, vector<1x32xf32>
    %c0_3 = arith.constant 0 : index
    %c0_4 = arith.constant 0 : index
    %2 = vector.load %arg2[%c0_3, %c0_4] : memref<1x32xf32, #tpu.memory_space<vmem>>, vector<1x32xf32>
    %cst = arith.constant dense<0.000000e+00> : vector<2xf32>
    %3 = vector.multi_reduction <add>, %0, %cst [1] : vector<2x32xf32> to vector<2xf32>
    %4 = vector.shape_cast %3 : vector<2xf32> to vector<2x1xf32>
    %cst_5 = arith.constant 3.200000e+01 : f32
    %5 = vector.broadcast %cst_5 : f32 to vector<2x1xf32>
    %6 = arith.divf %4, %5 : vector<2x1xf32>
    %7 = vector.broadcast %6 : vector<2x1xf32> to vector<2x32xf32>
    %8 = arith.subf %0, %7 : vector<2x32xf32>
    %9 = arith.mulf %8, %8 : vector<2x32xf32>
    %cst_6 = arith.constant dense<0.000000e+00> : vector<2xf32>
    %10 = vector.multi_reduction <add>, %9, %cst_6 [1] : vector<2x32xf32> to vector<2xf32>
    %11 = vector.shape_cast %10 : vector<2xf32> to vector<2x1xf32>
    %cst_7 = arith.constant 3.200000e+01 : f32
    %12 = vector.broadcast %cst_7 : f32 to vector<2x1xf32>
    %13 = arith.divf %11, %12 : vector<2x1xf32>
    %cst_8 = arith.constant 9.99999974E-6 : f32
    %14 = vector.broadcast %cst_8 : f32 to vector<2x1xf32>
    %15 = arith.addf %13, %14 : vector<2x1xf32>
    %16 = math.rsqrt %15 : vector<2x1xf32>
    %17 = vector.broadcast %16 : vector<2x1xf32> to vector<2x32xf32>
    %18 = arith.mulf %8, %17 : vector<2x32xf32>
    %19 = vector.broadcast %1 : vector<1x32xf32> to vector<2x32xf32>
    %20 = arith.mulf %18, %19 : vector<2x32xf32>
    %21 = vector.broadcast %2 : vector<1x32xf32> to vector<2x32xf32>
    %22 = arith.addf %20, %21 : vector<2x32xf32>
    %c0_9 = arith.constant 0 : index
    %c0_10 = arith.constant 0 : index
    %23 = vector.load %arg3[%c0_9, %c0_10] : memref<32x8xf32, #tpu.memory_space<vmem>>, vector<32x8xf32>
    %cst_11 = arith.constant dense<0.000000e+00> : vector<2x8xf32>
    %24 = tpu.matmul %22, %23, %cst_11 {dimension_numbers = #tpu.dot_dimension_numbers<[1], [0], [0], [1], [0, 0, 1, 1], [], []>} : vector<2x32xf32>, vector<32x8xf32>, vector<2x8xf32> -> vector<2x8xf32>
    %c0_12 = arith.constant 0 : index
    %c0_13 = arith.constant 0 : index
    %25 = vector.load %arg4[%c0_12, %c0_13] : memref<1x8xf32, #tpu.memory_space<vmem>>, vector<1x8xf32>
    %26 = vector.broadcast %25 : vector<1x8xf32> to vector<2x8xf32>
    %27 = arith.addf %24, %26 : vector<2x8xf32>
    %c0_14 = arith.constant 0 : index
    %c0_15 = arith.constant 0 : index
    %28 = vector.load %arg5[%c0_14, %c0_15] : memref<2x8xf32, #tpu.memory_space<vmem>>, vector<2x8xf32>
    tpu.vector_store %arg5[%c0_14, %c0_15], %27 {strides = array<i32>} : memref<2x8xf32, #tpu.memory_space<vmem>>, vector<2x8xf32>,
    return
  }
}

</mosaic_0001>

<bundles_post_ra>
// kernel: _lambda_.4
= control target key start
LH: loop header
LB: loop body
LE: loop exit
PB: predicated region body
PF: predicated region fallthrough
CT: control target
= control target key end

     0   :  { %vm33_vm0 = vcmask 523264   ;;  %vm131_vm1 = vcmask 261120   ;;  %s266_s1 = inlined_call_operand.vmem [shape: f32[64,32], index: 1, kind: input, shape index: {}]   ;;  %s267_s0 = inlined_call_operand.vmem [shape: f32[32,64], index: 0, kind: input, shape index: {}]   ;;  %s268_s2 = inlined_call_operand.vmem [shape: f32[1,32], index: 2, kind: input, shape index: {}]   ;;  %s269_s3 = inlined_call_operand.vmem [shape: f32[32,32], index: 3, kind: output, shape index: {}]  }
   0x1   :  { %v25_v0 = vld [vmem:[%s266_s1 + $0x38] sm:$0xff]  ;;  %v24_v1 = vld [vmem:[%s266_s1 + $0x30] sm:$0xff]  ;;  %v23_v2 = vld [vmem:[%s266_s1 + $0x28] sm:$0xff] }
   0x2   :  { %157 = vmatprep.subr.mxu0 %v25_v0  ;;  %179 = vmatprep.subr.mxu1 %v25_v0  ;;  %v22_v3 = vld [vmem:[%s266_s1 + $0x20] sm:$0xff]  ;;  %v21_v4 = vld [vmem:[%s266_s1 + $0x18] sm:$0xff]  ;;  %v20_v5 = vld [vmem:[%s266_s1 + $0x10] sm:$0xff] }
   0x3   :  { %158 = vmatpush3.msra.mxu0 %v25_v0  ;;  %187 = vmatpush3.msra.mxu1 %v25_v0  ;;  %v19_v6 = vld [vmem:[%s266_s1 + $0x8] sm:$0xff]  ;;  %v18_v7 = vld [vmem:[%s266_s1] sm:$0xff]  ;;  %v16_v9 = vld [vmem:[%s267_s0 + $0x10] sm:$0xff] }
   0x4   :  { %159 = vmatprep.subr.mxu0 %v24_v1  ;;  %180 = vmatprep.subr.mxu1 %v24_v1  ;;  %v14_v8 = vld [vmem:[%s267_s0] sm:$0xff]  ;;  %v15_v10 = vld [vmem:[%s267_s0 + $0x8] sm:$0xff]  ;;  %v17_v11 = vld [vmem:[%s267_s0 + $0x18] sm:$0xff] }
   0x5   :  { %160 = vmatpush3.msra.mxu0 %v24_v1  ;;  %188 = vmatpush3.msra.mxu1 %v24_v1  ;;  %v140_v12 = vld [vmem:[%s268_s2] ss:$0 sm:$0xff] }
   0x6   :  { %161 = vmatprep.subr.mxu0 %v23_v2  ;;  %181 = vmatprep.subr.mxu1 %v23_v2 }
   0x7   :  { %162 = vmatpush3.msra.mxu0 %v23_v2  ;;  %189 = vmatpush3.msra.mxu1 %v23_v2 }
   0x8   :  { %163 = vmatprep.subr.mxu0 %v22_v3  ;;  %182 = vmatprep.subr.mxu1 %v22_v3 }
   0x9   :  { %164 = vmatpush3.msra.mxu0 %v22_v3  ;;  %190 = vmatpush3.msra.mxu1 %v22_v3 }
   0xa   :  { %165 = vmatprep.subr.mxu0 %v21_v4  ;;  %183 = vmatprep.subr.mxu1 %v21_v4 }
   0xb   :  { %166 = vmatpush3.msra.mxu0 %v21_v4  ;;  %191 = vmatpush3.msra.mxu1 %v21_v4 }
   0xc   :  { %167 = vmatprep.subr.mxu0 %v20_v5  ;;  %184 = vmatprep.subr.mxu1 %v20_v5 }
   0xd   :  { %168 = vmatpush3.msra.mxu0 %v20_v5  ;;  %192 = vmatpush3.msra.mxu1 %v20_v5 }
   0xe   :  { %169 = vmatprep.subr.mxu0 %v19_v6  ;;  %185 = vmatprep.subr.mxu1 %v19_v6 }
   0xf   :  { %170 = vmatpush3.msra.mxu0 %v19_v6  ;;  %193 = vmatpush3.msra.mxu1 %v19_v6 }
  0x10   :  { %171 = vmatprep.subr.mxu0 %v18_v7  ;;  %186 = vmatprep.subr.mxu1 %v18_v7 }
  0x11   :  { %172 = vmatpush3.msra.mxu0 %v18_v7  ;;  %194 = vmatpush3.msra.mxu1 %v18_v7 }
  0x12   :  { %173 = vmatprep.mubr.msk.f32.mxu0 %vm33_vm0, %v14_v8  ;;  %176 = vmatprep.mubr.msk.f32.mxu1 %vm33_vm0, %v16_v9 }
  0x13   :  { %174 = vmatmul.mubr.msk.f32.vlgmr.msra.gmra.mxu0 %vm33_vm0, %v15_v10  ;;  %177 = vmatmul.mubr.msk.f32.vlgmr.msra.gmra.mxu1 %vm33_vm0, %v17_v11 }
  0xd3   :  { %v175_v13 = vpop.f32.mrf.mxu0  ;;  %v178_v14 = vpop.f32.mrf.mxu1 }
  0xd4   :  { %v118_v15 = vadd.f32 %v175_v13, %v140_v12  ;;  %v128_v16 = vadd.f32 %v178_v14, %v140_v12 }
  0xd5   :  { %v112_v17 = vpop.f32.mrf.mxu0  ;;  %v122_v18 = vpop.f32.mrf.mxu1 }
  0xd6   :  { %133 = vst.msk [vmem:[%s269_s3 + $0x8] sm:$0xff] %vm131_vm1, %v118_v15  ;;  %135 = vst.msk [vmem:[%s269_s3 + $0x18] sm:$0xff] %vm131_vm1, %v128_v16  ;;  %v113_v19 = vadd.f32 %v140_v12, %v112_v17  ;;  %v123_v20 = vadd.f32 %v140_v12, %v122_v18 }
  0xd8   :  { %132 = vst.msk [vmem:[%s269_s3] sm:$0xff] %vm131_vm1, %v113_v19  ;;  %134 = vst.msk [vmem:[%s269_s3 + $0x10] sm:$0xff] %vm131_vm1, %v123_v20 }

// kernel: _lambda_.7
= control target key start
LH: loop header
LB: loop body
LE: loop exit
PB: predicated region body
PF: predicated region fallthrough
CT: control target
= control target key end

     0   :  { %vm24_vm0 = vcmask 254976   ;;  %s261_s0 = inlined_call_operand.vmem [shape: f32[2,32], index: 0, kind: input, shape index: {}]   ;;  %s262_s1 = inlined_call_operand.vmem [shape: f32[1,32], index: 1, kind: input, shape index: {}]   ;;  %s263_s2 = inlined_call_operand.vmem [shape: f32[1,32], index: 2, kind: input, shape index: {}]   ;;  %s264_s3 = inlined_call_operand.vmem [shape: f32[32,8], index: 3, kind: input, shape index: {}]   ;;  %s265_s4 = inlined_call_operand.vmem [shape: f32[1,8], index: 4, kind: input, shape index: {}]   ;;  %s266_s5 = inlined_call_operand.hbm [shape: f32[2,8], index: 5, kind: output, shape index: {}]  }
   0x1   :  { %v21_v0 = vld [vmem:[%s261_s0] sm:$0x3] }
   0x2   :  { %10 = vsyncpa [#allocation3], 0  ;;  %v25_v1 = vsel %vm24_vm0, %v21_v0, 0.0  ;;  %v56_v7 = vld [vmem:[%s264_s3 + $0x18] sm:$0xff]  ;;  %v201_v8 = vmov 0.0   ;;  %v55_v9 = vld [vmem:[%s264_s3 + $0x10] sm:$0xff] }
   0x3   :  { %26 = vadd.xlane.f32.xlu0 %v25_v1  ;;  %163 = vmatprep.subr.mxu0 %v201_v8  ;;  %vm202_vm1 = vmmov 0   ;;  %v54_v10 = vld [vmem:[%s264_s3 + $0x8] sm:$0xff]  ;;  %v53_v11 = vld [vmem:[%s264_s3] sm:$0xff]  ;;  %vm64_vm2 = vcmask 261120   ;;  %s203_s7 = smov [#allocation2]   ;;  %vm138_vm3 = vcmask 58368  }
   0x4   :  { %171 = vmatprep.mubr.msk.f32.mxu0 %vm202_vm1, %v201_v8  ;;  %164 = vmatpush3.msra.mxu0 %v56_v7  ;;  %v154_v16 = vld [vmem:[%s262_s1] ss:$0 sm:$0xff]  ;;  %s146_s8 = sshll.u32 %s203_s7, 4  ;;  %s147_s8 = int_to_ptr.vmem [resolvable:$true] %s146_s8 }
   0x5   :  { %165 = vmatprep.subr.mxu0 %v201_v8  ;;  %v155_v18 = vld [vmem:[%s263_s2] ss:$0 sm:$0xff]  ;;  %s179_s1 = scalar_lea.vmem %s147_s8, 32  ;;  %p184_p1 = scmp.lt.s32.totalorder %s147_s8, %s147_s8 }
   0x6   :  { %166 = vmatpush3.msra.mxu0 %v55_v9  ;;  %v156_v21 = vld [vmem:[%s265_s4] ss:$0 sm:$0xff]  ;;  %p180_p0 = scmp.ne.s32.totalorder %s147_s8, %s179_s1  ;;  %p185_p2 = scmp.lt.s32.totalorder %s179_s1, %s179_s1 }
   0x7   :  { %167 = vmatprep.subr.mxu0 %v201_v8 }
   0x8   :  { %168 = vmatpush3.msra.mxu0 %v54_v10  ;;  %p186_p3 = por %p185_p2, %p184_p1 }
   0x9   :  { %169 = vmatprep.subr.mxu0 %v201_v8 }
   0xa   :  { %170 = vmatpush3.msra.mxu0 %v53_v11  ;;  %p187_p4 = pnand %p186_p3, %p180_p0 }
  0x8c   :  { %v27_v2 = vpop.xlane.xlu0 %26 }
  0x8d   :  { %v29_v3 = vmul.f32 0.03125, %v27_v2 }
  0x8f   :  { %v30_v4 = vsub.f32 %v21_v0, %v29_v3 }
  0x91   :  { %v31_v5 = vmul.f32 %v30_v4, %v30_v4 }
  0x93   :  { %v32_v6 = vsel %vm24_vm0, %v31_v5, 0.0 }
  0x94   :  { %33 = vadd.xlane.f32.xlu0 %v32_v6 }
 0x11d   :  { %v34_v12 = vpop.xlane.xlu0 %33 }
 0x11e   :  { %v35_v13 = vmul.f32 0.03125, %v34_v12 }
 0x120   :  { %v36_v14 = vadd.f32 1e-05, %v35_v13 }
 0x122   :  { %177 = vrsqrt.f32 %v36_v14 }
 0x12f   :  { %v178_v15 = vpop.eup %177 }
 0x130   :  { %v38_v17 = vmul.f32 %v178_v15, %v30_v4 }
 0x132   :  { %v45_v19 = vmul.f32 %v154_v16, %v38_v17 }
 0x134   :  { %v52_v20 = vadd.f32 %v155_v18, %v45_v19 }
 0x136   :  { %172 = vmatmul.mubr.msk.f32.vlgmr.msra.gmra.mxu0 %vm64_vm2, %v52_v20 }
 0x1f6   :  { %v134_v22 = vpop.f32.mrf.mxu0 }
 0x1f7   :  { %v135_v23 = vadd.f32 %v156_v21, %v134_v22 }
 0x1f8   :  { %v173_v24 = vpop.f32.mrf.mxu0 }
 0x1f9   :  { %139 = vst.msk [vmem:[#allocation2] sm:$0x3] %vm138_vm3, %v135_v23 }
 0x1fa   :  { %190 = shalt.err (!%p187_p4)
}
 0x1fb   :  { %149 = dma.vmem_to_hbm [thread:$0]  %s147_s8, 32, %s266_s5, [#allocation3]  }
 0x1fc   :  { %199 = dma.done.wait [#allocation3], 32  }
 0x1fd   :  { %200 = vsyncadd [#allocation3], 4294967264 }
 0x1fe   :  { %153 = vsyncpa [#allocation3], 1 }

// kernel: _lambda_.5
= control target key start
LH: loop header
LB: loop body
LE: loop exit
PB: predicated region body
PF: predicated region fallthrough
CT: control target
= control target key end

     0   :  { %vm59_vm0 = vcmask 261120   ;;  %v3183_v35 = vmov 0.0   ;;  %vm3184_vm1 = vmmov 0   ;;  %s3185_s18 = smov 96   ;;  %s3187_s19 = smov 120   ;;  %vm279_vm2 = vcmask 64512   ;;  %s4162_s0 = inlined_call_operand.vmem [shape: f32[40,32], index: 0, kind: input, shape index: {}, may-alias: {0,14}]   ;;  %s4163_s4 = inlined_call_operand.vmem [shape: f32[32,96], index: 4, kind: input, shape index: {}]   ;;  %s4164_s2 = inlined_call_operand.vmem [shape: f32[1,32], index: 2, kind: input, shape index: {}]   ;;  %s4165_s3 = inlined_call_operand.vmem [shape: f32[1,32], index: 3, kind: input, shape index: {}]   ;;  %s4166_s5 = inlined_call_operand.vmem [shape: f32[1,96], index: 5, kind: input, shape index: {}]   ;;  %s4167_s1 = inlined_call_operand.vmem [shape: f32[40,40], index: 1, kind: input, shape index: {}]   ;;  %s4168_s6 = inlined_call_operand.vmem [shape: f32[32,32], index: 6, kind: input, shape index: {}]   ;;  %s4169_s7 = inlined_call_operand.vmem [shape: f32[1,32], index: 7, kind: input, shape index: {}]   ;;  %s4170_s10 = inlined_call_operand.vmem [shape: f32[32,64], index: 10, kind: input, shape index: {}]   ;;  %s4171_s8 = inlined_call_operand.vmem [shape: f32[1,32], index: 8, kind: input, shape index: {}]   ;;  %s4172_s9 = inlined_call_operand.vmem [shape: f32[1,32], index: 9, kind: input, shape index: {}]   ;;  %s4173_s12 = inlined_call_operand.vmem [shape: f32[64,32], index: 12, kind: input, shape index: {}]   ;;  %s4174_s11 = inlined_call_operand.vmem [shape: f32[1,64], index: 11, kind: input, shape index: {}]   ;;  %s4175_s13 = inlined_call_operand.vmem [shape: f32[1,32], index: 13, kind: input, shape index: {}]   ;;  %s4176_s14 = inlined_call_operand.vmem [shape: f32[40,32], index: 14, kind: output, shape index: {}, may-alias: {0,14}]  }
   0x1   :  { %v47_v0 = vld [vmem:[%s4162_s0] sm:$0xff]  ;;  %v49_v1 = vld [vmem:[%s4162_s0 + $0x10] sm:$0xff]  ;;  %v48_v2 = vld [vmem:[%s4162_s0 + $0x8] sm:$0xff]  ;;  %2685 = vmatprep.subr.mxu0 %v3183_v35  ;;  %2693 = vmatprep.mubr.msk.f32.mxu0 %vm3184_vm1, %v3183_v35  ;;  %s3188_s20 = smov 64   ;;  %vm400_vm3 = vcmask 326656   ;;  %s3190_s15 = smov 80  }
   0x2   :  { %v60_v3 = vsel %vm59_vm0, %v47_v0, 0.0  ;;  %v66_v4 = vsel %vm59_vm0, %v49_v1, 0.0  ;;  %v50_v5 = vld [vmem:[%s4162_s0 + $0x18] sm:$0xff]  ;;  %v63_v6 = vsel %vm59_vm0, %v48_v2, 0.0  ;;  %v51_v8 = vld [vmem:[%s4162_s0 + $0x20] sm:$0xff]  ;;  %v150_v37 = vld [vmem:[%s4163_s4 + $0x10] sm:$0xff]  ;;  %2708 = vmatprep.subr.mxu1 %v3183_v35  ;;  %2718 = vmatprep.mubr.msk.f32.mxu1 %vm3184_vm1, %v3183_v35 }
   0x3   :  { %61 = vadd.xlane.f32.xlu0 %v60_v3  ;;  %67 = vadd.xlane.f32.xlu1 %v66_v4  ;;  %v69_v7 = vsel %vm59_vm0, %v50_v5, 0.0  ;;  %v72_v9 = vsel %vm59_vm0, %v51_v8, 0.0  ;;  %v151_v36 = vld [vmem:[%s4163_s4 + $0x18] sm:$0xff]  ;;  %v149_v38 = vld [vmem:[%s4163_s4 + $0x8] sm:$0xff]  ;;  %v148_v39 = vld [vmem:[%s4163_s4] sm:$0xff]  ;;  %s3189_s4 = smov 56  }
   0x4   :  { %2686 = vmatpush3.msra.mxu0 %v151_v36  ;;  %v2447_v56 = vld [vmem:[%s4164_s2] ss:$0 sm:$0xff]  ;;  %s3191_s16 = smov 112   ;;  %s3192_s17 = smov 48   ;;  %vm2327_vm5 = vcmask 523264  }
   0x5   :  { %2687 = vmatprep.subr.mxu0 %v3183_v35  ;;  %v2448_v58 = vld [vmem:[%s4165_s3] ss:$0 sm:$0xff] }
   0x6   :  { %2688 = vmatpush3.msra.mxu0 %v150_v37 }
   0x7   :  { %64 = vadd.xlane.f32.xlu0 %v63_v6  ;;  %70 = vadd.xlane.f32.xlu1 %v69_v7 }
   0x8   :  { %2689 = vmatprep.subr.mxu0 %v3183_v35 }
   0x9   :  { %2690 = vmatpush3.msra.mxu0 %v149_v38 }
   0xa   :  { %2691 = vmatprep.subr.mxu0 %v3183_v35 }
   0xb   :  { %73 = vadd.xlane.f32.xlu0 %v72_v9  ;;  %2692 = vmatpush3.msra.mxu0 %v148_v39 }
   0xc   :  { %2733 = vmatprep.subr.mxu0 %v3183_v35 }
  0x8c   :  { %v62_v10 = vpop.xlane.xlu0 %61  ;;  %v68_v11 = vpop.xlane.xlu1 %67 }
  0x8d   :  { %v76_v12 = vmul.f32 0.03125, %v62_v10  ;;  %v78_v13 = vmul.f32 0.03125, %v68_v11 }
  0x8f   :  { %v3291_v14 = vsub.f32 %v47_v0, %v76_v12  ;;  %v3293_v15 = vsub.f32 %v49_v1, %v78_v13 }
  0x90   :  { %v65_v16 = vpop.xlane.xlu0 %64  ;;  %v71_v17 = vpop.xlane.xlu1 %70 }
  0x91   :  { %v77_v18 = vmul.f32 0.03125, %v65_v16  ;;  %v79_v19 = vmul.f32 0.03125, %v71_v17  ;;  %v86_v20 = vmul.f32 %v3291_v14, %v3291_v14  ;;  %v88_v21 = vmul.f32 %v3293_v15, %v3293_v15 }
  0x93   :  { %v3299_v22 = vsub.f32 %v48_v2, %v77_v18  ;;  %v3301_v23 = vsub.f32 %v50_v5, %v79_v19  ;;  %v91_v24 = vsel %vm59_vm0, %v86_v20, 0.0  ;;  %v97_v27 = vsel %vm59_vm0, %v88_v21, 0.0  ;;  %v2449_v19 = vld [vmem:[%s4166_s5] ss:$0 sm:$0xff]  ;;  %s3186_s5 = smov 88  }
  0x94   :  { %92 = vadd.xlane.f32.xlu1 %v91_v24  ;;  %v74_v25 = vpop.xlane.xlu0 %73 }
  0x95   :  { %v80_v26 = vmul.f32 0.03125, %v74_v25  ;;  %v87_v28 = vmul.f32 %v3299_v22, %v3299_v22  ;;  %v89_v29 = vmul.f32 %v3301_v23, %v3301_v23 }
  0x97   :  { %v3309_v30 = vsub.f32 %v51_v8, %v80_v26  ;;  %v94_v31 = vsel %vm59_vm0, %v87_v28, 0.0  ;;  %v100_v32 = vsel %vm59_vm0, %v89_v29, 0.0 }
  0x98   :  { %98 = vadd.xlane.f32.xlu1 %v97_v27  ;;  %95 = vadd.xlane.f32.xlu0 %v94_v31 }
  0x99   :  { %v90_v33 = vmul.f32 %v3309_v30, %v3309_v30 }
  0x9b   :  { %v103_v34 = vsel %vm59_vm0, %v90_v33, 0.0 }
  0x9c   :  { %101 = vadd.xlane.f32.xlu0 %v100_v32  ;;  %104 = vadd.xlane.f32.xlu1 %v103_v34 }
 0x11d   :  { %v93_v40 = vpop.xlane.xlu1 %92 }
 0x11e   :  { %v106_v41 = vmul.f32 0.03125, %v93_v40 }
 0x120   :  { %v111_v42 = vadd.f32 1e-05, %v106_v41 }
 0x121   :  { %v99_v43 = vpop.xlane.xlu1 %98  ;;  %v96_v44 = vpop.xlane.xlu0 %95 }
 0x122   :  { %3053 = vrsqrt.f32 %v111_v42  ;;  %v108_v45 = vmul.f32 0.03125, %v99_v43  ;;  %v107_v46 = vmul.f32 0.03125, %v96_v44 }
 0x124   :  { %v113_v47 = vadd.f32 1e-05, %v108_v45  ;;  %v112_v48 = vadd.f32 1e-05, %v107_v46 }
 0x125   :  { %v105_v49 = vpop.xlane.xlu1 %104  ;;  %v102_v50 = vpop.xlane.xlu0 %101 }
 0x126   :  { %3055 = vrsqrt.f32 %v113_v47  ;;  %v110_v51 = vmul.f32 0.03125, %v105_v49  ;;  %v109_v52 = vmul.f32 0.03125, %v102_v50  ;;  %v3462_v50 = vld [vmem:[%s4167_s1] sm:$0xff] }
 0x127   :  { %3057 = vrsqrt.f32 %v112_v48 }
 0x128   :  { %v114_v53 = vadd.f32 1e-05, %v109_v52  ;;  %v115_v54 = vadd.f32 1e-05, %v110_v51 }
 0x12a   :  { %3059 = vrsqrt.f32 %v114_v53 }
 0x12b   :  { %3061 = vrsqrt.f32 %v115_v54 }
 0x12f   :  { %v3054_v55 = vpop.eup %3053 }
 0x130   :  { %v121_v57 = vmul.f32 %v3054_v55, %v3291_v14  ;;  %v3470_v55 = vld [vmem:[%s4167_s1 + $0x8] sm:$0xff] }
 0x132   :  { %v132_v59 = vmul.f32 %v2447_v56, %v121_v57 }
 0x133   :  { %v3056_v60 = vpop.eup %3055 }
 0x134   :  { %v3058_v61 = vpop.eup %3057  ;;  %v143_v62 = vadd.f32 %v2448_v58, %v132_v59  ;;  %v123_v0 = vmul.f32 %v3056_v60, %v3293_v15 }
 0x135   :  { %v122_v63 = vmul.f32 %v3058_v61, %v3299_v22  ;;  %v3480_v61 = vld [vmem:[%s4167_s1 + $0x10] sm:$0xff] }
 0x136   :  { %2694 = vmatmul.mubr.msk.f32.vlgmr.msra.gmra.mxu0 %vm59_vm0, %v143_v62  ;;  %v134_v4 = vmul.f32 %v2447_v56, %v123_v0 }
 0x137   :  { %2696 = vmatprep.mubr.msk.f32.mxu0 %vm3184_vm1, %v3183_v35  ;;  %v133_v1 = vmul.f32 %v2447_v56, %v122_v63  ;;  %v3060_v2 = vpop.eup %3059 }
 0x138   :  { %v124_v5 = vmul.f32 %v3060_v2, %v3301_v23  ;;  %v3062_v6 = vpop.eup %3061  ;;  %v145_v7 = vadd.f32 %v2448_v58, %v134_v4 }
 0x139   :  { %v144_v3 = vadd.f32 %v2448_v58, %v133_v1  ;;  %v125_v9 = vmul.f32 %v3062_v6, %v3309_v30 }
 0x13a   :  { %v135_v8 = vmul.f32 %v2447_v56, %v124_v5 }
 0x13b   :  { %2697 = vmatmul.mubr.msk.f32.gmra.mxu0 %vm59_vm0, %v144_v3  ;;  %v136_v11 = vmul.f32 %v2447_v56, %v125_v9  ;;  %v3488_v3 = vld [vmem:[%s4167_s1 + $0x18] sm:$0xff]  ;;  %v3495_v9 = vld [vmem:[%s4167_s1 + $0x20] sm:$0xff] }
 0x13c   :  { %2699 = vmatprep.mubr.msk.f32.mxu0 %vm3184_vm1, %v3183_v35  ;;  %v146_v10 = vadd.f32 %v2448_v58, %v135_v8 }
 0x13d   :  { %v147_v12 = vadd.f32 %v2448_v58, %v136_v11 }
 0x13f   :  { %2700 = vmatmul.mubr.msk.f32.gmra.mxu0 %vm59_vm0, %v145_v7 }
 0x140   :  { %2702 = vmatprep.mubr.msk.f32.mxu0 %vm3184_vm1, %v3183_v35 }
 0x143   :  { %2703 = vmatmul.mubr.msk.f32.gmra.mxu0 %vm59_vm0, %v146_v10 }
 0x144   :  { %2705 = vmatprep.mubr.msk.f32.mxu0 %vm3184_vm1, %v3183_v35 }
 0x147   :  { %2706 = vmatmul.mubr.msk.f32.gmra.mxu0 %vm59_vm0, %v147_v12 }
 0x148   :  { %2743 = vmatprep.mubr.msk.f32.mxu0 %vm3184_vm1, %v3183_v35 }
 0x1f6   :  { %v240_v13 = vpop.f32.mrf.mxu0 }
 0x1f7   :  { %v3376_v27 = vadd.f32 %v2449_v19, %v240_v13 }
 0x1f8   :  { %v2695_v14 = vpop.f32.mrf.mxu0 }
 0x1fb   :  { %v245_v15 = vpop.f32.mrf.mxu0 }
 0x1fc   :  { %v3378_v28 = vadd.f32 %v2449_v19, %v245_v15 }
 0x1fd   :  { %v2698_v16 = vpop.f32.mrf.mxu0 }
 0x1ff   :  { %v250_v17 = vpop.f32.mrf.mxu0 }
 0x200   :  { %v3370_v24 = vadd.f32 %v2449_v19, %v250_v17 }
 0x201   :  { %v2701_v18 = vpop.f32.mrf.mxu0 }
 0x203   :  { %v255_v20 = vpop.f32.mrf.mxu0 }
 0x204   :  { %v3367_v21 = vadd.f32 %v2449_v19, %v255_v20 }
 0x205   :  { %v2704_v22 = vpop.f32.mrf.mxu0 }
 0x206   :  { %275 = vrot.lane.b32.xlu1 %v3367_v21, %s3185_s18 }
 0x207   :  { %v260_v23 = vpop.f32.mrf.mxu0 }
 0x208   :  { %v3372_v25 = vadd.f32 %v2449_v19, %v260_v23 }
 0x209   :  { %v2707_v26 = vpop.f32.mrf.mxu0 }
 0x20a   :  { %273 = vrot.lane.b32.xlu1 %v3370_v24, %s3185_s18  ;;  %277 = vrot.lane.b32.xlu0 %v3372_v25, %s3185_s18 }
 0x20e   :  { %271 = vrot.lane.b32.xlu1 %v3378_v28, %s3185_s18  ;;  %269 = vrot.lane.b32.xlu0 %v3376_v27, %s3185_s18 }
 0x212   :  { %595 = vrot.lane.b32.xlu1 %v3372_v25, %s3186_s5  ;;  %593 = vrot.lane.b32.xlu0 %v3367_v21, %s3186_s5 }
 0x216   :  { %591 = vrot.lane.b32.xlu1 %v3370_v24, %s3186_s5  ;;  %589 = vrot.lane.b32.xlu0 %v3378_v28, %s3186_s5 }
 0x21a   :  { %587 = vrot.lane.b32.xlu1 %v3376_v27, %s3186_s5  ;;  %577 = vrot.lane.b32.xlu0 %v3376_v27, %s3187_s19 }
 0x21e   :  { %579 = vrot.lane.b32.xlu1 %v3378_v28, %s3187_s19  ;;  %581 = vrot.lane.b32.xlu0 %v3370_v24, %s3187_s19 }
 0x222   :  { %583 = vrot.lane.b32.xlu1 %v3367_v21, %s3187_s19  ;;  %585 = vrot.lane.b32.xlu0 %v3372_v25, %s3187_s19  ;;  %s3193_s19 = smov 72  }
 0x226   :  { %462 = vrot.lane.b32.xlu1 %v3367_v21, %s3188_s20  ;;  %464 = vrot.lane.b32.xlu0 %v3372_v25, %s3188_s20 }
 0x22a   :  { %460 = vrot.lane.b32.xlu1 %v3370_v24, %s3188_s20 }
 0x22e   :  { %458 = vrot.lane.b32.xlu1 %v3378_v28, %s3188_s20 }
 0x278   :  { %v276_v29 = vpop.permute.xlu1 %275 }
 0x27c   :  { %v274_v30 = vpop.permute.xlu1 %273  ;;  %v278_v31 = vpop.permute.xlu0 %277 }
 0x27d   :  { %2709 = vmatpush3.xpose.msk.msra.mxu1 %vm279_vm2, %v278_v31 }
 0x27e   :  { %2710 = vmatprep.subr.mxu1 %v3183_v35 }
 0x280   :  { %v272_v32 = vpop.permute.xlu1 %271  ;;  %v270_v33 = vpop.permute.xlu0 %269 }
 0x281   :  { %2711 = vmatpush3.xpose.msk.msra.mxu1 %vm279_vm2, %v276_v29 }
 0x282   :  { %2712 = vmatprep.subr.mxu1 %v3183_v35 }
 0x284   :  { %v596_v34 = vpop.permute.xlu1 %595  ;;  %v594_v36 = vpop.permute.xlu0 %593 }
 0x285   :  { %2713 = vmatpush3.xpose.msk.msra.mxu1 %vm279_vm2, %v274_v30 }
 0x286   :  { %2714 = vmatprep.subr.mxu1 %v3183_v35 }
 0x288   :  { %v592_v37 = vpop.permute.xlu1 %591  ;;  %v590_v38 = vpop.permute.xlu0 %589 }
 0x289   :  { %2715 = vmatpush3.xpose.msk.msra.mxu1 %vm279_vm2, %v272_v32 }
 0x28a   :  { %2716 = vmatprep.subr.mxu1 %v3183_v35 }
 0x28c   :  { %v588_v39 = vpop.permute.xlu1 %587  ;;  %v578_v40 = vpop.permute.xlu0 %577 }
 0x28d   :  { %2717 = vmatpush3.xpose.msk.msra.mxu1 %vm279_vm2, %v270_v33 }
 0x28e   :  { %2758 = vmatprep.subr.mxu1 %v3183_v35 }
 0x290   :  { %v580_v41 = vpop.permute.xlu1 %579  ;;  %2719 = vmatmul.mubr.msk.f32.vlgmr.msra.gmra.mxu1 %vm279_vm2, %v3376_v27  ;;  %v582_v42 = vpop.permute.xlu0 %581 }
 0x291   :  { %2759 = vmatpush3.xpose.msk.msra.mxu1 %vm279_vm2, %v596_v34  ;;  %2721 = vmatprep.mubr.msk.f32.mxu1 %vm3184_vm1, %v3183_v35 }
 0x292   :  { %2760 = vmatprep.subr.mxu1 %v3183_v35 }
 0x294   :  { %v584_v43 = vpop.permute.xlu1 %583  ;;  %2722 = vmatmul.mubr.msk.f32.gmra.mxu1 %vm279_vm2, %v3378_v28  ;;  %v586_v44 = vpop.permute.xlu0 %585 }
 0x295   :  { %2761 = vmatpush3.xpose.msk.msra.mxu1 %vm279_vm2, %v594_v36  ;;  %2724 = vmatprep.mubr.msk.f32.mxu1 %vm3184_vm1, %v3183_v35 }
 0x296   :  { %2762 = vmatprep.subr.mxu1 %v3183_v35 }
 0x298   :  { %v463_v45 = vpop.permute.xlu1 %462  ;;  %2725 = vmatmul.mubr.msk.f32.gmra.mxu1 %vm279_vm2, %v3370_v24  ;;  %v465_v46 = vpop.permute.xlu0 %464 }
 0x299   :  { %2734 = vmatpush3.msra.mxu0 %v465_v46  ;;  %2763 = vmatpush3.xpose.msk.msra.mxu1 %vm279_vm2, %v592_v37 }
 0x29a   :  { %2735 = vmatprep.subr.mxu0 %v3183_v35  ;;  %2727 = vmatprep.mubr.msk.f32.mxu1 %vm3184_vm1, %v3183_v35 }
 0x29b   :  { %2736 = vmatpush3.msra.mxu0 %v463_v45  ;;  %2764 = vmatprep.subr.mxu1 %v3183_v35 }
 0x29c   :  { %v461_v47 = vpop.permute.xlu1 %460  ;;  %2728 = vmatmul.mubr.msk.f32.gmra.mxu1 %vm279_vm2, %v3367_v21  ;;  %2737 = vmatprep.subr.mxu0 %v3183_v35 }
 0x29d   :  { %2738 = vmatpush3.msra.mxu0 %v461_v47  ;;  %2765 = vmatpush3.xpose.msk.msra.mxu1 %vm279_vm2, %v590_v38 }
 0x29e   :  { %2730 = vmatprep.mubr.msk.f32.mxu1 %vm3184_vm1, %v3183_v35  ;;  %2739 = vmatprep.subr.mxu0 %v3183_v35 }
 0x29f   :  { %2766 = vmatprep.subr.mxu1 %v3183_v35 }
 0x2a0   :  { %v459_v48 = vpop.permute.xlu1 %458  ;;  %2731 = vmatmul.mubr.msk.f32.gmra.mxu1 %vm279_vm2, %v3372_v25 }
 0x2a1   :  { %2740 = vmatpush3.msra.mxu0 %v459_v48  ;;  %2767 = vmatpush3.xpose.msk.msra.mxu1 %vm279_vm2, %v588_v39 }
 0x2a2   :  { %2768 = vmatprep.mubr.msk.f32.mxu1 %vm3184_vm1, %v3183_v35  ;;  %2741 = vmatprep.subr.mxu0 %v3183_v35 }
 0x2a3   :  { %3030 = vmatprep.subr.mxu1 %v3183_v35 }
 0x2a4   :  { %2769 = vmatmul.mubr.msk.f32.vlgmr.msra.gmra.mxu1 %vm279_vm2, %v578_v40 }
 0x2a5   :  { %2771 = vmatprep.mubr.msk.f32.mxu1 %vm3184_vm1, %v3183_v35 }
 0x2a8   :  { %2772 = vmatmul.mubr.msk.f32.gmra.mxu1 %vm279_vm2, %v580_v41 }
 0x2a9   :  { %2774 = vmatprep.mubr.msk.f32.mxu1 %vm3184_vm1, %v3183_v35 }
 0x2ac   :  { %2775 = vmatmul.mubr.msk.f32.gmra.mxu1 %vm279_vm2, %v582_v42 }
 0x2ad   :  { %2777 = vmatprep.mubr.msk.f32.mxu1 %vm3184_vm1, %v3183_v35 }
 0x2b0   :  { %2778 = vmatmul.mubr.msk.f32.gmra.mxu1 %vm279_vm2, %v584_v43 }
 0x2b1   :  { %2780 = vmatprep.mubr.msk.f32.mxu1 %vm3184_vm1, %v3183_v35 }
 0x2b4   :  { %2781 = vmatmul.mubr.msk.f32.gmra.mxu1 %vm279_vm2, %v586_v44 }
 0x2b5   :  { %2805 = vmatprep.mubr.msk.f32.mxu1 %vm3184_vm1, %v3183_v35 }
 0x350   :  { %v366_v49 = vpop.f32.mrf.mxu1 }
 0x351   :  { %v390_v51 = vmul.f32 0.35355338, %v366_v49 }
 0x352   :  { %v2720_v52 = vpop.f32.mrf.mxu1 }
 0x353   :  { %v3465_v53 = vadd.f32 %v390_v51, %v3462_v50 }
 0x354   :  { %v371_v54 = vpop.f32.mrf.mxu1 }
 0x355   :  { %v391_v56 = vmul.f32 0.35355338, %v371_v54  ;;  %v401_v57 = vsel %vm400_vm3, %v3465_v53, -inf }
 0x356   :  { %402 = vmax.xlane.f32.xlu1 %v401_v57  ;;  %v2723_v58 = vpop.f32.mrf.mxu1 }
 0x357   :  { %v3475_v59 = vadd.f32 %v391_v56, %v3470_v55 }
 0x358   :  { %v376_v60 = vpop.f32.mrf.mxu1 }
 0x359   :  { %v392_v62 = vmul.f32 0.35355338, %v376_v60  ;;  %v404_v63 = vsel %vm400_vm3, %v3475_v59, -inf }
 0x35a   :  { %405 = vmax.xlane.f32.xlu0 %v404_v63  ;;  %v2726_v0 = vpop.f32.mrf.mxu1 }
 0x35b   :  { %v397_v1 = vadd.f32 %v392_v62, %v3480_v61 }
 0x35c   :  { %v381_v2 = vpop.f32.mrf.mxu1 }
 0x35d   :  { %v393_v4 = vmul.f32 0.35355338, %v381_v2  ;;  %v407_v5 = vsel %vm400_vm3, %v397_v1, -inf }
 0x35e   :  { %408 = vmax.xlane.f32.xlu0 %v407_v5  ;;  %v2729_v6 = vpop.f32.mrf.mxu1 }
 0x35f   :  { %v398_v7 = vadd.f32 %v393_v4, %v3488_v3 }
 0x360   :  { %v386_v8 = vpop.f32.mrf.mxu1 }
 0x361   :  { %v394_v10 = vmul.f32 0.35355338, %v386_v8  ;;  %v410_v11 = vsel %vm400_vm3, %v398_v7, -inf }
 0x362   :  { %411 = vmax.xlane.f32.xlu0 %v410_v11  ;;  %v2732_v12 = vpop.f32.mrf.mxu1 }
 0x363   :  { %v399_v13 = vadd.f32 %v394_v10, %v3495_v9 }
 0x364   :  { %v683_v14 = vpop.f32.mrf.mxu1 }
 0x365   :  { %v707_v15 = vmul.f32 0.35355338, %v683_v14  ;;  %v413_v16 = vsel %vm400_vm3, %v399_v13, -inf }
 0x366   :  { %414 = vmax.xlane.f32.xlu1 %v413_v16  ;;  %v2770_v17 = vpop.f32.mrf.mxu1 }
 0x367   :  { %v712_v18 = vadd.f32 %v707_v15, %v3462_v50 }
 0x368   :  { %v688_v19 = vpop.f32.mrf.mxu1 }
 0x369   :  { %v708_v20 = vmul.f32 0.35355338, %v688_v19  ;;  %v717_v22 = vsel %vm400_vm3, %v712_v18, -inf }
 0x36a   :  { %718 = vmax.xlane.f32.xlu0 %v717_v22  ;;  %v2773_v23 = vpop.f32.mrf.mxu1 }
 0x36b   :  { %v713_v26 = vadd.f32 %v708_v20, %v3470_v55 }
 0x36c   :  { %v693_v29 = vpop.f32.mrf.mxu1 }
 0x36d   :  { %v709_v30 = vmul.f32 0.35355338, %v693_v29  ;;  %v720_v31 = vsel %vm400_vm3, %v713_v26, -inf }
 0x36e   :  { %721 = vmax.xlane.f32.xlu1 %v720_v31  ;;  %v2776_v32 = vpop.f32.mrf.mxu1 }
 0x36f   :  { %v3505_v33 = vadd.f32 %v709_v30, %v3480_v61 }
 0x370   :  { %v698_v34 = vpop.f32.mrf.mxu1 }
 0x371   :  { %v723_v36 = vsel %vm400_vm3, %v3505_v33, -inf  ;;  %v710_v40 = vmul.f32 0.35355338, %v698_v34 }
 0x372   :  { %724 = vmax.xlane.f32.xlu0 %v723_v36  ;;  %v2779_v37 = vpop.f32.mrf.mxu1 }
 0x373   :  { %v3514_v42 = vadd.f32 %v710_v40, %v3488_v3 }
 0x374   :  { %v703_v38 = vpop.f32.mrf.mxu1 }
 0x375   :  { %v711_v41 = vmul.f32 0.35355338, %v703_v38  ;;  %v726_v43 = vsel %vm400_vm3, %v3514_v42, -inf }
 0x376   :  { %v2782_v39 = vpop.f32.mrf.mxu1 }
 0x377   :  { %v3519_v44 = vadd.f32 %v711_v41, %v3495_v9 }
 0x379   :  { %v729_v45 = vsel %vm400_vm3, %v3519_v44, -inf }
 0x37f   :  { %456 = vrot.lane.b32.xlu1 %v3376_v27, %s3188_s20  ;;  %s3194_s20 = smov 104  }
 0x388   :  { %780 = vrot.lane.b32.xlu0 %v3372_v25, %s3189_s4 }
 0x3a3   :  { %727 = vmax.xlane.f32.xlu1 %v726_v43 }
 0x3a7   :  { %730 = vmax.xlane.f32.xlu0 %v729_v45 }
 0x3b4   :  { %778 = vrot.lane.b32.xlu1 %v3367_v21, %s3189_s4 }
 0x3bd   :  { %776 = vrot.lane.b32.xlu0 %v3370_v24, %s3189_s4 }
 0x3df   :  { %v403_v46 = vpop.xlane.xlu1 %402 }
 0x3e0   :  { %v416_v47 = vsub.f32 %v3465_v53, %v403_v46 }
 0x3e2   :  { %v421_v48 = vmul.f32 1.442695, %v416_v47 }
 0x3e3   :  { %v406_v49 = vpop.xlane.xlu0 %405 }
 0x3e4   :  { %3063 = vpow2.f32 %v421_v48  ;;  %v417_v51 = vsub.f32 %v3475_v59, %v406_v49 }
 0x3e6   :  { %v423_v52 = vmul.f32 1.442695, %v417_v51 }
 0x3e7   :  { %v409_v54 = vpop.xlane.xlu0 %408 }
 0x3e8   :  { %3065 = vpow2.f32 %v423_v52  ;;  %v418_v56 = vsub.f32 %v397_v1, %v409_v54 }
 0x3ea   :  { %v425_v57 = vmul.f32 1.442695, %v418_v56 }
 0x3eb   :  { %v412_v58 = vpop.xlane.xlu0 %411 }
 0x3ec   :  { %3067 = vpow2.f32 %v425_v57  ;;  %v419_v60 = vsub.f32 %v398_v7, %v412_v58 }
 0x3ee   :  { %v427_v62 = vmul.f32 1.442695, %v419_v60 }
 0x3ef   :  { %v415_v63 = vpop.xlane.xlu1 %414 }
 0x3f0   :  { %3069 = vpow2.f32 %v427_v62  ;;  %v420_v0 = vsub.f32 %v399_v13, %v415_v63 }
 0x3f1   :  { %v3529_v2 = vpop.eup %3063 }
 0x3f2   :  { %v429_v53 = vmul.f32 1.442695, %v420_v0  ;;  %v431_v4 = vsel %vm400_vm3, %v3529_v2, 0.0 }
 0x3f3   :  { %432 = vadd.xlane.f32.xlu1 %v431_v4  ;;  %v719_v59 = vpop.xlane.xlu0 %718 }
 0x3f4   :  { %3071 = vpow2.f32 %v429_v53  ;;  %v732_v5 = vsub.f32 %v712_v18, %v719_v59 }
 0x3f5   :  { %v3533_v6 = vpop.eup %3065 }
 0x3f6   :  { %v737_v1 = vmul.f32 1.442695, %v732_v5  ;;  %v434_v7 = vsel %vm400_vm3, %v3533_v6, 0.0 }
 0x3f7   :  { %v722_v8 = vpop.xlane.xlu1 %721  ;;  %435 = vadd.xlane.f32.xlu0 %v434_v7 }
 0x3f8   :  { %3073 = vpow2.f32 %v737_v1  ;;  %v733_v10 = vsub.f32 %v713_v26, %v722_v8 }
 0x3f9   :  { %v3537_v11 = vpop.eup %3067 }
 0x3fa   :  { %v739_v12 = vmul.f32 1.442695, %v733_v10  ;;  %v437_v13 = vsel %vm400_vm3, %v3537_v11, 0.0 }
 0x3fb   :  { %v457_v14 = vpop.permute.xlu1 %456  ;;  %438 = vadd.xlane.f32.xlu1 %v437_v13  ;;  %v725_v15 = vpop.xlane.xlu0 %724 }
 0x3fc   :  { %3075 = vpow2.f32 %v739_v12  ;;  %v734_v16 = vsub.f32 %v3505_v33, %v725_v15  ;;  %2742 = vmatpush3.msra.mxu0 %v457_v14  ;;  %v576_v12 = vld [vmem:[%s4168_s6] sm:$0xff] }
 0x3fd   :  { %v3542_v17 = vpop.eup %3069  ;;  %2783 = vmatprep.subr.mxu0 %v3183_v35 }
 0x3fe   :  { %v741_v18 = vmul.f32 1.442695, %v734_v16  ;;  %v440_v19 = vsel %vm400_vm3, %v3542_v17, 0.0 }
 0x3ff   :  { %441 = vadd.xlane.f32.xlu0 %v440_v19  ;;  %v3547_v20 = vpop.permute.xlu0 %780 }
 0x400   :  { %3077 = vpow2.f32 %v741_v18  ;;  %3035 = vmatpush3.msra.mxu1 %v3547_v20 }
 0x401   :  { %v3550_v22 = vpop.eup %3071  ;;  %3031 = vmatprep.subr.mxu1 %v3183_v35 }
 0x402   :  { %v443_v23 = vsel %vm400_vm3, %v3550_v22, 0.0 }
 0x403   :  { %444 = vadd.xlane.f32.xlu1 %v443_v23 }
 0x405   :  { %v3555_v26 = vpop.eup %3073 }
 0x406   :  { %v747_v29 = vsel %vm400_vm3, %v3555_v26, 0.0 }
 0x407   :  { %748 = vadd.xlane.f32.xlu1 %v747_v29 }
 0x409   :  { %v3559_v30 = vpop.eup %3075 }
 0x40a   :  { %v750_v31 = vsel %vm400_vm3, %v3559_v30, 0.0 }
 0x40b   :  { %751 = vadd.xlane.f32.xlu0 %v750_v31 }
 0x40d   :  { %v3563_v32 = vpop.eup %3077 }
 0x40e   :  { %v753_v33 = vsel %vm400_vm3, %v3563_v32, 0.0 }
 0x40f   :  { %754 = vadd.xlane.f32.xlu1 %v753_v33 }
 0x420   :  { %774 = vrot.lane.b32.xlu1 %v3378_v28, %s3189_s4 }
 0x424   :  { %1121 = vrot.lane.b32.xlu1 %v3372_v25, %s3190_s15 }
 0x428   :  { %1117 = vrot.lane.b32.xlu1 %v3370_v24, %s3190_s15 }
 0x42c   :  { %v728_v34 = vpop.xlane.xlu1 %727  ;;  %1113 = vrot.lane.b32.xlu1 %v3376_v27, %s3190_s15 }
 0x42d   :  { %v735_v36 = vsub.f32 %v3514_v42, %v728_v34 }
 0x42f   :  { %v743_v37 = vmul.f32 1.442695, %v735_v36 }
 0x430   :  { %v779_v38 = vpop.permute.xlu1 %778  ;;  %1105 = vrot.lane.b32.xlu1 %v3378_v28, %s3191_s16  ;;  %v731_v39 = vpop.xlane.xlu0 %730 }
 0x431   :  { %3079 = vpow2.f32 %v743_v37  ;;  %v736_v40 = vsub.f32 %v3519_v44, %v731_v39  ;;  %3036 = vmatpush3.msra.mxu1 %v779_v38 }
 0x432   :  { %3032 = vmatprep.subr.mxu1 %v3183_v35 }
 0x433   :  { %v745_v41 = vmul.f32 1.442695, %v736_v40 }
 0x434   :  { %1109 = vrot.lane.b32.xlu1 %v3367_v21, %s3191_s16  ;;  %v777_v43 = vpop.permute.xlu0 %776 }
 0x435   :  { %3081 = vpow2.f32 %v745_v41  ;;  %3037 = vmatpush3.msra.mxu1 %v777_v43 }
 0x436   :  { %3033 = vmatprep.subr.mxu1 %v3183_v35 }
 0x438   :  { %1306 = vrot.lane.b32.xlu1 %v3372_v25, %s3192_s17 }
 0x43c   :  { %1302 = vrot.lane.b32.xlu1 %v3370_v24, %s3192_s17 }
 0x43e   :  { %v3583_v42 = vpop.eup %3079 }
 0x43f   :  { %v756_v44 = vsel %vm400_vm3, %v3583_v42, 0.0 }
 0x440   :  { %757 = vadd.xlane.f32.xlu0 %v756_v44  ;;  %1300 = vrot.lane.b32.xlu1 %v3378_v28, %s3192_s17 }
 0x442   :  { %v3588_v45 = vpop.eup %3081 }
 0x443   :  { %v759_v46 = vsel %vm400_vm3, %v3588_v45, 0.0 }
 0x444   :  { %1298 = vrot.lane.b32.xlu1 %v3376_v27, %s3192_s17  ;;  %760 = vadd.xlane.f32.xlu0 %v759_v46 }
 0x45a   :  { %772 = vrot.lane.b32.xlu0 %v3376_v27, %s3189_s4 }
 0x45e   :  { %1119 = vrot.lane.b32.xlu0 %v3367_v21, %s3190_s15 }
 0x462   :  { %1115 = vrot.lane.b32.xlu0 %v3378_v28, %s3190_s15 }
 0x466   :  { %1103 = vrot.lane.b32.xlu0 %v3376_v27, %s3191_s16 }
 0x46a   :  { %1107 = vrot.lane.b32.xlu0 %v3370_v24, %s3191_s16 }
 0x46e   :  { %1111 = vrot.lane.b32.xlu0 %v3372_v25, %s3191_s16  ;;  %s3195_s16 = smov 40  }
 0x472   :  { %1304 = vrot.lane.b32.xlu0 %v3367_v21, %s3192_s17 }
 0x47c   :  { %v433_v47 = vpop.xlane.xlu1 %432 }
 0x47d   :  { %3083 = vrcp.f32 %v433_v47 }
 0x480   :  { %v436_v48 = vpop.xlane.xlu0 %435 }
 0x481   :  { %3085 = vrcp.f32 %v436_v48 }
 0x484   :  { %v439_v49 = vpop.xlane.xlu1 %438 }
 0x485   :  { %3087 = vrcp.f32 %v439_v49 }
 0x488   :  { %v442_v51 = vpop.xlane.xlu0 %441 }
 0x489   :  { %3089 = vrcp.f32 %v442_v51 }
 0x48a   :  { %v3084_v52 = vpop.eup %3083 }
 0x48b   :  { %v451_v54 = vmul.f32 %v3084_v52, %v3529_v2 }
 0x48c   :  { %v445_v56 = vpop.xlane.xlu1 %444 }
 0x48d   :  { %3091 = vrcp.f32 %v445_v56  ;;  %2744 = vmatmul.mubr.msk.f32.vlgmr.msra.gmra.mxu0 %vm400_vm3, %v451_v54 }
 0x48e   :  { %v3086_v57 = vpop.eup %3085  ;;  %2784 = vmatpush3.msra.mxu0 %v3547_v20  ;;  %2746 = vmatprep.mubr.msk.f32.mxu0 %vm3184_vm1, %v3183_v35 }
 0x48f   :  { %2785 = vmatprep.subr.mxu0 %v3183_v35  ;;  %v452_v58 = vmul.f32 %v3086_v57, %v3533_v6 }
 0x490   :  { %2786 = vmatpush3.msra.mxu0 %v779_v38  ;;  %v749_v63 = vpop.xlane.xlu1 %748 }
 0x491   :  { %2787 = vmatprep.subr.mxu0 %v3183_v35  ;;  %2747 = vmatmul.mubr.msk.f32.gmra.mxu0 %vm400_vm3, %v452_v58  ;;  %3093 = vrcp.f32 %v749_v63 }
 0x492   :  { %v3088_v60 = vpop.eup %3087  ;;  %2788 = vmatpush3.msra.mxu0 %v777_v43  ;;  %2749 = vmatprep.mubr.msk.f32.mxu0 %vm3184_vm1, %v3183_v35 }
 0x493   :  { %v453_v62 = vmul.f32 %v3088_v60, %v3537_v11  ;;  %2789 = vmatprep.subr.mxu0 %v3183_v35 }
 0x494   :  { %v752_v6 = vpop.xlane.xlu0 %751 }
 0x495   :  { %2750 = vmatmul.mubr.msk.f32.gmra.mxu0 %vm400_vm3, %v453_v62  ;;  %3095 = vrcp.f32 %v752_v6 }
 0x496   :  { %v3090_v0 = vpop.eup %3089  ;;  %2752 = vmatprep.mubr.msk.f32.mxu0 %vm3184_vm1, %v3183_v35 }
 0x497   :  { %v454_v2 = vmul.f32 %v3090_v0, %v3542_v17 }
 0x498   :  { %v755_v53 = vpop.xlane.xlu1 %754 }
 0x499   :  { %2753 = vmatmul.mubr.msk.f32.gmra.mxu0 %vm400_vm3, %v454_v2  ;;  %3097 = vrcp.f32 %v755_v53 }
 0x49a   :  { %v3092_v4 = vpop.eup %3091  ;;  %2755 = vmatprep.mubr.msk.f32.mxu0 %vm3184_vm1, %v3183_v35 }
 0x49b   :  { %v455_v59 = vmul.f32 %v3092_v4, %v3550_v22  ;;  %v892_v22 = vld [vmem:[%s4168_s6 + $0x8] sm:$0xff] }
 0x49c   :  { %v775_v5 = vpop.permute.xlu1 %774 }
 0x49d   :  { %2756 = vmatmul.mubr.msk.f32.gmra.mxu0 %vm400_vm3, %v455_v59  ;;  %3038 = vmatpush3.msra.mxu1 %v775_v5 }
 0x49e   :  { %2790 = vmatpush3.msra.mxu0 %v775_v5  ;;  %3034 = vmatprep.subr.mxu1 %v3183_v35  ;;  %v3094_v8 = vpop.eup %3093 }
 0x49f   :  { %2791 = vmatprep.subr.mxu0 %v3183_v35  ;;  %2793 = vmatprep.mubr.msk.f32.mxu0 %vm3184_vm1, %v3183_v35  ;;  %v767_v10 = vmul.f32 %v3094_v8, %v3555_v26 }
 0x4a0   :  { %v1122_v23 = vpop.permute.xlu1 %1121 }
 0x4a2   :  { %v3096_v13 = vpop.eup %3095 }
 0x4a3   :  { %v768_v14 = vmul.f32 %v3096_v13, %v3559_v30 }
 0x4a4   :  { %v1118_v26 = vpop.permute.xlu1 %1117 }
 0x4a6   :  { %v3098_v15 = vpop.eup %3097 }
 0x4a7   :  { %v769_v16 = vmul.f32 %v3098_v15, %v3563_v32 }
 0x4a8   :  { %v3659_v29 = vpop.permute.xlu1 %1113 }
 0x4ac   :  { %v3661_v31 = vpop.permute.xlu1 %1105 }
 0x4b0   :  { %v3663_v33 = vpop.permute.xlu1 %1109 }
 0x4b4   :  { %v1307_v36 = vpop.permute.xlu1 %1306 }
 0x4b8   :  { %v1303_v38 = vpop.permute.xlu1 %1302 }
 0x4bc   :  { %v1301_v43 = vpop.permute.xlu1 %1300 }
 0x4c0   :  { %v1299_v47 = vpop.permute.xlu1 %1298 }
 0x4c9   :  { %v758_v1 = vpop.xlane.xlu0 %757 }
 0x4ca   :  { %3099 = vrcp.f32 %v758_v1 }
 0x4cd   :  { %v761_v7 = vpop.xlane.xlu0 %760 }
 0x4ce   :  { %3101 = vrcp.f32 %v761_v7 }
 0x4d1   :  { %v773_v11 = vpop.permute.xlu0 %772 }
 0x4d2   :  { %2792 = vmatpush3.msra.mxu0 %v773_v11  ;;  %3039 = vmatpush3.msra.mxu1 %v773_v11 }
 0x4d3   :  { %2794 = vmatmul.mubr.msk.f32.vlgmr.msra.gmra.mxu0 %vm400_vm3, %v767_v10  ;;  %2825 = vmatprep.subr.mxu0 %v3183_v35 }
 0x4d4   :  { %2796 = vmatprep.mubr.msk.f32.mxu0 %vm3184_vm1, %v3183_v35  ;;  %2826 = vmatpush3.msra.mxu0 %v576_v12 }
 0x4d5   :  { %2867 = vmatprep.subr.mxu0 %v3183_v35  ;;  %2808 = vmatprep.subr.mxu1 %v3183_v35  ;;  %v1120_v30 = vpop.permute.xlu0 %1119 }
 0x4d7   :  { %2797 = vmatmul.mubr.msk.f32.gmra.mxu0 %vm400_vm3, %v768_v14  ;;  %v3100_v17 = vpop.eup %3099 }
 0x4d8   :  { %2799 = vmatprep.mubr.msk.f32.mxu0 %vm3184_vm1, %v3183_v35  ;;  %v770_v20 = vmul.f32 %v3100_v17, %v3583_v42 }
 0x4d9   :  { %v1116_v32 = vpop.permute.xlu0 %1115 }
 0x4db   :  { %v3102_v18 = vpop.eup %3101  ;;  %2800 = vmatmul.mubr.msk.f32.gmra.mxu0 %vm400_vm3, %v769_v16 }
 0x4dc   :  { %v771_v19 = vmul.f32 %v3102_v18, %v3588_v45  ;;  %2802 = vmatprep.mubr.msk.f32.mxu0 %vm3184_vm1, %v3183_v35 }
 0x4dd   :  { %v3665_v34 = vpop.permute.xlu0 %1103 }
 0x4de   :  { %2806 = vmatmul.mubr.msk.f32.vlgmr.msra.gmra.mxu1 %vm400_vm3, %v771_v19 }
 0x4df   :  { %2803 = vmatmul.mubr.msk.f32.gmra.mxu0 %vm400_vm3, %v770_v20  ;;  %2810 = vmatprep.mubr.msk.f32.mxu1 %vm3184_vm1, %v3183_v35 }
 0x4e0   :  { %2827 = vmatprep.mubr.msk.f32.mxu0 %vm3184_vm1, %v3183_v35  ;;  %2809 = vmatpush3.msra.mxu1 %v892_v22 }
 0x4e1   :  { %2842 = vmatprep.subr.mxu1 %v3183_v35  ;;  %v3667_v37 = vpop.permute.xlu0 %1107 }
 0x4e5   :  { %v3669_v39 = vpop.permute.xlu0 %1111 }
 0x4e9   :  { %v1305_v42 = vpop.permute.xlu0 %1304 }
 0x54d   :  { %v552_v40 = vpop.f32.mrf.mxu0 }
 0x54e   :  { %2828 = vmatmul.mubr.msk.f32.vlgmr.msra.gmra.mxu0 %vm279_vm2, %v552_v40 }
 0x54f   :  { %2868 = vmatpush3.msra.mxu0 %v1307_v36  ;;  %v2745_v41 = vpop.f32.mrf.mxu0  ;;  %2830 = vmatprep.mubr.msk.f32.mxu0 %vm3184_vm1, %v3183_v35 }
 0x550   :  { %2869 = vmatprep.subr.mxu0 %v3183_v35 }
 0x551   :  { %2870 = vmatpush3.msra.mxu0 %v1305_v42  ;;  %v557_v44 = vpop.f32.mrf.mxu0 }
 0x552   :  { %2871 = vmatprep.subr.mxu0 %v3183_v35  ;;  %2831 = vmatmul.mubr.msk.f32.gmra.mxu0 %vm279_vm2, %v557_v44 }
 0x553   :  { %2872 = vmatpush3.msra.mxu0 %v1303_v38  ;;  %v2748_v45 = vpop.f32.mrf.mxu0  ;;  %2833 = vmatprep.mubr.msk.f32.mxu0 %vm3184_vm1, %v3183_v35 }
 0x554   :  { %2873 = vmatprep.subr.mxu0 %v3183_v35 }
 0x555   :  { %2874 = vmatpush3.msra.mxu0 %v1301_v43  ;;  %v562_v46 = vpop.f32.mrf.mxu0 }
 0x556   :  { %2875 = vmatprep.subr.mxu0 %v3183_v35  ;;  %2834 = vmatmul.mubr.msk.f32.gmra.mxu0 %vm279_vm2, %v562_v46 }
 0x557   :  { %2876 = vmatpush3.msra.mxu0 %v1299_v47  ;;  %v2751_v48 = vpop.f32.mrf.mxu0  ;;  %2836 = vmatprep.mubr.msk.f32.mxu0 %vm3184_vm1, %v3183_v35 }
 0x558   :  { %2909 = vmatprep.subr.mxu0 %v3183_v35 }
 0x559   :  { %v567_v49 = vpop.f32.mrf.mxu0 }
 0x55a   :  { %2837 = vmatmul.mubr.msk.f32.gmra.mxu0 %vm279_vm2, %v567_v49 }
 0x55b   :  { %v2754_v51 = vpop.f32.mrf.mxu0  ;;  %2839 = vmatprep.mubr.msk.f32.mxu0 %vm3184_vm1, %v3183_v35 }
 0x55d   :  { %v572_v52 = vpop.f32.mrf.mxu0 }
 0x55e   :  { %2840 = vmatmul.mubr.msk.f32.gmra.mxu0 %vm279_vm2, %v572_v52 }
 0x55f   :  { %v2757_v54 = vpop.f32.mrf.mxu0  ;;  %2877 = vmatprep.mubr.msk.f32.mxu0 %vm3184_vm1, %v3183_v35 }
 0x593   :  { %v868_v56 = vpop.f32.mrf.mxu0 }
 0x594   :  { %2811 = vmatmul.mubr.msk.f32.vlgmr.msra.gmra.mxu1 %vm279_vm2, %v868_v56 }
 0x595   :  { %2843 = vmatpush3.xpose.msk.msra.mxu1 %vm279_vm2, %v1122_v23  ;;  %v2795_v57 = vpop.f32.mrf.mxu0  ;;  %2813 = vmatprep.mubr.msk.f32.mxu1 %vm3184_vm1, %v3183_v35 }
 0x596   :  { %2844 = vmatprep.subr.mxu1 %v3183_v35 }
 0x597   :  { %v873_v58 = vpop.f32.mrf.mxu0 }
 0x598   :  { %2814 = vmatmul.mubr.msk.f32.gmra.mxu1 %vm279_vm2, %v873_v58 }
 0x599   :  { %2845 = vmatpush3.xpose.msk.msra.mxu1 %vm279_vm2, %v1120_v30  ;;  %v2798_v60 = vpop.f32.mrf.mxu0  ;;  %2816 = vmatprep.mubr.msk.f32.mxu1 %vm3184_vm1, %v3183_v35 }
 0x59a   :  { %2846 = vmatprep.subr.mxu1 %v3183_v35 }
 0x59b   :  { %v878_v62 = vpop.f32.mrf.mxu0 }
 0x59c   :  { %2817 = vmatmul.mubr.msk.f32.gmra.mxu1 %vm279_vm2, %v878_v62 }
 0x59d   :  { %2847 = vmatpush3.xpose.msk.msra.mxu1 %vm279_vm2, %v1118_v26  ;;  %v2801_v63 = vpop.f32.mrf.mxu0  ;;  %2819 = vmatprep.mubr.msk.f32.mxu1 %vm3184_vm1, %v3183_v35 }
 0x59e   :  { %v888_v0 = vpop.f32.mrf.mxu1  ;;  %2848 = vmatprep.subr.mxu1 %v3183_v35 }
 0x59f   :  { %v883_v2 = vpop.f32.mrf.mxu0 }
 0x5a0   :  { %v2807_v53 = vpop.f32.mrf.mxu1  ;;  %2820 = vmatmul.mubr.msk.f32.gmra.mxu1 %vm279_vm2, %v883_v2 }
 0x5a1   :  { %2849 = vmatpush3.xpose.msk.msra.mxu1 %vm279_vm2, %v1116_v32  ;;  %v2804_v4 = vpop.f32.mrf.mxu0  ;;  %2822 = vmatprep.mubr.msk.f32.mxu1 %vm3184_vm1, %v3183_v35 }
 0x5a2   :  { %2850 = vmatprep.subr.mxu1 %v3183_v35 }
 0x5a4   :  { %2823 = vmatmul.mubr.msk.f32.gmra.mxu1 %vm279_vm2, %v888_v0 }
 0x5a5   :  { %2851 = vmatpush3.xpose.msk.msra.mxu1 %vm279_vm2, %v3659_v29  ;;  %2852 = vmatprep.mubr.msk.f32.mxu1 %vm3184_vm1, %v3183_v35 }
 0x5a6   :  { %2892 = vmatprep.subr.mxu1 %v3183_v35 }
 0x5a8   :  { %2853 = vmatmul.mubr.msk.f32.vlgmr.msra.gmra.mxu1 %vm279_vm2, %v3665_v34 }
 0x5a9   :  { %2855 = vmatprep.mubr.msk.f32.mxu1 %vm3184_vm1, %v3183_v35 }
 0x5ac   :  { %2856 = vmatmul.mubr.msk.f32.gmra.mxu1 %vm279_vm2, %v3661_v31 }
 0x5ad   :  { %2858 = vmatprep.mubr.msk.f32.mxu1 %vm3184_vm1, %v3183_v35 }
 0x5b0   :  { %2859 = vmatmul.mubr.msk.f32.gmra.mxu1 %vm279_vm2, %v3667_v37 }
 0x5b1   :  { %2861 = vmatprep.mubr.msk.f32.mxu1 %vm3184_vm1, %v3183_v35 }
 0x5b4   :  { %2862 = vmatmul.mubr.msk.f32.gmra.mxu1 %vm279_vm2, %v3663_v33 }
 0x5b5   :  { %2864 = vmatprep.mubr.msk.f32.mxu1 %vm3184_vm1, %v3183_v35 }
 0x5b8   :  { %2865 = vmatmul.mubr.msk.f32.gmra.mxu1 %vm279_vm2, %v3669_v39 }
 0x5b9   :  { %2894 = vmatprep.mubr.msk.f32.mxu1 %vm3184_vm1, %v3183_v35 }
 0x60e   :  { %v3737_v59 = vpop.f32.mrf.mxu0 }
 0x610   :  { %v2829_v5 = vpop.f32.mrf.mxu0 }
 0x612   :  { %v3739_v6 = vpop.f32.mrf.mxu0 }
 0x614   :  { %v2832_v1 = vpop.f32.mrf.mxu0 }
 0x616   :  { %v3741_v7 = vpop.f32.mrf.mxu0 }
 0x618   :  { %v2835_v8 = vpop.f32.mrf.mxu0 }
 0x61a   :  { %v3743_v10 = vpop.f32.mrf.mxu0 }
 0x61c   :  { %v2838_v11 = vpop.f32.mrf.mxu0 }
 0x61e   :  { %v3745_v12 = vpop.f32.mrf.mxu0 }
 0x620   :  { %v2841_v13 = vpop.f32.mrf.mxu0 }
 0x654   :  { %v3747_v14 = vpop.f32.mrf.mxu1 }
 0x656   :  { %v2812_v15 = vpop.f32.mrf.mxu1 }
 0x658   :  { %v3749_v16 = vpop.f32.mrf.mxu1 }
 0x65a   :  { %v2815_v17 = vpop.f32.mrf.mxu1 }
 0x65c   :  { %v3751_v18 = vpop.f32.mrf.mxu1 }
 0x65e   :  { %v2818_v19 = vpop.f32.mrf.mxu1 }
 0x660   :  { %v3753_v20 = vpop.f32.mrf.mxu1 }
 0x662   :  { %v2821_v22 = vpop.f32.mrf.mxu1 }
 0x664   :  { %v3755_v23 = vpop.f32.mrf.mxu1 }
 0x666   :  { %v2824_v26 = vpop.f32.mrf.mxu1 }
 0x668   :  { %v1209_v29 = vpop.f32.mrf.mxu1 }
 0x669   :  { %v1233_v30 = vmul.f32 0.35355338, %v1209_v29 }
 0x66a   :  { %v2854_v31 = vpop.f32.mrf.mxu1 }
 0x66b   :  { %v1238_v32 = vadd.f32 %v1233_v30, %v3462_v50 }
 0x66c   :  { %v1214_v33 = vpop.f32.mrf.mxu1 }
 0x66d   :  { %v1234_v34 = vmul.f32 0.35355338, %v1214_v33  ;;  %v1243_v36 = vsel %vm400_vm3, %v1238_v32, -inf }
 0x66e   :  { %1244 = vmax.xlane.f32.xlu1 %v1243_v36  ;;  %v2857_v37 = vpop.f32.mrf.mxu1 }
 0x66f   :  { %v1239_v38 = vadd.f32 %v1234_v34, %v3470_v55 }
 0x670   :  { %v1219_v39 = vpop.f32.mrf.mxu1 }
 0x671   :  { %v1235_v40 = vmul.f32 0.35355338, %v1219_v39  ;;  %v1246_v41 = vsel %vm400_vm3, %v1239_v38, -inf }
 0x672   :  { %1247 = vmax.xlane.f32.xlu0 %v1246_v41  ;;  %v2860_v43 = vpop.f32.mrf.mxu1 }
 0x673   :  { %v1240_v42 = vadd.f32 %v1235_v40, %v3480_v61 }
 0x674   :  { %v1224_v44 = vpop.f32.mrf.mxu1 }
 0x675   :  { %v1236_v45 = vmul.f32 0.35355338, %v1224_v44  ;;  %v1249_v50 = vsel %vm400_vm3, %v1240_v42, -inf }
 0x676   :  { %1250 = vmax.xlane.f32.xlu0 %v1249_v50  ;;  %v2863_v46 = vpop.f32.mrf.mxu1 }
 0x677   :  { %v1241_v47 = vadd.f32 %v1236_v45, %v3488_v3 }
 0x678   :  { %v1229_v48 = vpop.f32.mrf.mxu1 }
 0x679   :  { %v1237_v49 = vmul.f32 0.35355338, %v1229_v48  ;;  %v1252_v55 = vsel %vm400_vm3, %v1241_v47, -inf }
 0x67a   :  { %1253 = vmax.xlane.f32.xlu0 %v1252_v55  ;;  %v2866_v51 = vpop.f32.mrf.mxu1 }
 0x67b   :  { %v1242_v52 = vadd.f32 %v1237_v49, %v3495_v9 }
 0x67d   :  { %v1255_v54 = vsel %vm400_vm3, %v1242_v52, -inf }
 0x67e   :  { %1256 = vmax.xlane.f32.xlu1 %v1255_v54 }
 0x68f   :  { %1545 = vrot.lane.b32.xlu1 %v3367_v21, %s3193_s19 }
 0x690   :  { %1547 = vrot.lane.b32.xlu0 %v3372_v25, %s3193_s19 }
 0x6f7   :  { %v1245_v61 = vpop.xlane.xlu1 %1244 }
 0x6f8   :  { %v1258_v3 = vsub.f32 %v1238_v32, %v1245_v61 }
 0x6fa   :  { %v1263_v56 = vmul.f32 1.442695, %v1258_v3 }
 0x6fb   :  { %v1248_v57 = vpop.xlane.xlu0 %1247 }
 0x6fc   :  { %3103 = vpow2.f32 %v1263_v56  ;;  %v1259_v58 = vsub.f32 %v1239_v38, %v1248_v57 }
 0x6fe   :  { %v1265_v60 = vmul.f32 1.442695, %v1259_v58 }
 0x6ff   :  { %v1251_v62 = vpop.xlane.xlu0 %1250 }
 0x700   :  { %3105 = vpow2.f32 %v1265_v60  ;;  %v1260_v9 = vsub.f32 %v1240_v42, %v1251_v62 }
 0x702   :  { %v1267_v63 = vmul.f32 1.442695, %v1260_v9 }
 0x703   :  { %v1254_v8 = vpop.xlane.xlu0 %1253 }
 0x704   :  { %3107 = vpow2.f32 %v1267_v63  ;;  %v1261_v11 = vsub.f32 %v1241_v47, %v1254_v8 }
 0x706   :  { %v1269_v15 = vmul.f32 1.442695, %v1261_v11  ;;  %v3173_v11 = vld [vmem:[%s4167_s1] sm:$0xff] }
 0x707   :  { %v1257_v13 = vpop.xlane.xlu1 %1256  ;;  %v1548_v31 = vpop.permute.xlu0 %1547 }
 0x708   :  { %v1262_v17 = vsub.f32 %v1242_v52, %v1257_v13  ;;  %3109 = vpow2.f32 %v1269_v15  ;;  %v1418_v52 = vld [vmem:[%s4168_s6 + $0x10] sm:$0xff] }
 0x709   :  { %v3104_v0 = vpop.eup %3103  ;;  %2893 = vmatpush3.msra.mxu1 %v1418_v52 }
 0x70a   :  { %v1273_v2 = vsel %vm400_vm3, %v3104_v0, 0.0  ;;  %v1271_v19 = vmul.f32 1.442695, %v1262_v17  ;;  %2934 = vmatprep.subr.mxu1 %v3183_v35 }
 0x70b   :  { %1274 = vadd.xlane.f32.xlu0 %v1273_v2  ;;  %v1546_v32 = vpop.permute.xlu1 %1545 }
 0x70c   :  { %3111 = vpow2.f32 %v1271_v19 }
 0x70d   :  { %v3106_v53 = vpop.eup %3105 }
 0x70e   :  { %v1276_v4 = vsel %vm400_vm3, %v3106_v53, 0.0 }
 0x70f   :  { %1277 = vadd.xlane.f32.xlu1 %v1276_v4 }
 0x711   :  { %v3108_v5 = vpop.eup %3107 }
 0x712   :  { %v1279_v1 = vsel %vm400_vm3, %v3108_v5, 0.0 }
 0x713   :  { %1280 = vadd.xlane.f32.xlu0 %v1279_v1 }
 0x715   :  { %v3110_v22 = vpop.eup %3109 }
 0x716   :  { %v1282_v26 = vsel %vm400_vm3, %v3110_v22, 0.0 }
 0x719   :  { %v3112_v29 = vpop.eup %3111 }
 0x71a   :  { %v1285_v30 = vsel %vm400_vm3, %v3112_v29, 0.0 }
 0x720   :  { %1541 = vrot.lane.b32.xlu1 %v3378_v28, %s3193_s19 }
 0x729   :  { %1543 = vrot.lane.b32.xlu0 %v3370_v24, %s3193_s19 }
 0x744   :  { %1283 = vadd.xlane.f32.xlu1 %v1282_v26  ;;  %v3174_v26 = vld [vmem:[%s4167_s1 + $0x8] sm:$0xff] }
 0x748   :  { %1286 = vadd.xlane.f32.xlu0 %v1285_v30 }
 0x755   :  { %1529 = vrot.lane.b32.xlu1 %v3376_v27, %s3194_s20 }
 0x759   :  { %1533 = vrot.lane.b32.xlu1 %v3370_v24, %s3194_s20 }
 0x75d   :  { %1537 = vrot.lane.b32.xlu1 %v3372_v25, %s3194_s20 }
 0x75e   :  { %1539 = vrot.lane.b32.xlu0 %v3376_v27, %s3193_s19 }
 0x762   :  { %1531 = vrot.lane.b32.xlu0 %v3378_v28, %s3194_s20 }
 0x766   :  { %1535 = vrot.lane.b32.xlu0 %v3367_v21, %s3194_s20 }
 0x794   :  { %v1275_v33 = vpop.xlane.xlu0 %1274 }
 0x795   :  { %3113 = vrcp.f32 %v1275_v33 }
 0x798   :  { %v1278_v34 = vpop.xlane.xlu1 %1277 }
 0x799   :  { %3115 = vrcp.f32 %v1278_v34  ;;  %v3175_v34 = vld [vmem:[%s4167_s1 + $0x10] sm:$0xff] }
 0x79c   :  { %v1281_v36 = vpop.xlane.xlu0 %1280  ;;  %v1542_v44 = vpop.permute.xlu1 %1541 }
 0x79d   :  { %3117 = vrcp.f32 %v1281_v36 }
 0x7a0   :  { %v1544_v42 = vpop.permute.xlu0 %1543 }
 0x7a2   :  { %v3114_v37 = vpop.eup %3113 }
 0x7a3   :  { %v1293_v38 = vmul.f32 %v3114_v37, %v3104_v0 }
 0x7a5   :  { %2878 = vmatmul.mubr.msk.f32.vlgmr.msra.gmra.mxu0 %vm400_vm3, %v1293_v38 }
 0x7a6   :  { %v3116_v39 = vpop.eup %3115  ;;  %2910 = vmatpush3.xpose.msk.msra.mxu0 %vm279_vm2, %v1548_v31  ;;  %2880 = vmatprep.mubr.msk.f32.mxu0 %vm3184_vm1, %v3183_v35 }
 0x7a7   :  { %2911 = vmatprep.subr.mxu0 %v3183_v35  ;;  %v1294_v40 = vmul.f32 %v3116_v39, %v3106_v53 }
 0x7a9   :  { %2881 = vmatmul.mubr.msk.f32.gmra.mxu0 %vm400_vm3, %v1294_v40 }
 0x7aa   :  { %v3118_v41 = vpop.eup %3117  ;;  %2912 = vmatpush3.xpose.msk.msra.mxu0 %vm279_vm2, %v1546_v32  ;;  %2883 = vmatprep.mubr.msk.f32.mxu0 %vm3184_vm1, %v3183_v35 }
 0x7ab   :  { %2913 = vmatprep.subr.mxu0 %v3183_v35  ;;  %v1295_v43 = vmul.f32 %v3118_v41, %v3108_v5  ;;  %v3176_v41 = vld [vmem:[%s4167_s1 + $0x18] sm:$0xff] }
 0x7ad   :  { %2884 = vmatmul.mubr.msk.f32.gmra.mxu0 %vm400_vm3, %v1295_v43 }
 0x7ae   :  { %2914 = vmatpush3.xpose.msk.msra.mxu0 %vm279_vm2, %v1544_v42  ;;  %2886 = vmatprep.mubr.msk.f32.mxu0 %vm3184_vm1, %v3183_v35 }
 0x7af   :  { %2915 = vmatprep.subr.mxu0 %v3183_v35 }
 0x7b2   :  { %2916 = vmatpush3.xpose.msk.msra.mxu0 %vm279_vm2, %v1542_v44 }
 0x7b3   :  { %2917 = vmatprep.subr.mxu0 %v3183_v35 }
 0x7cd   :  { %v1284_v45 = vpop.xlane.xlu1 %1283 }
 0x7ce   :  { %3119 = vrcp.f32 %v1284_v45 }
 0x7d1   :  { %v1287_v50 = vpop.xlane.xlu0 %1286  ;;  %v1530_v51 = vpop.permute.xlu1 %1529 }
 0x7d2   :  { %3121 = vrcp.f32 %v1287_v50 }
 0x7d5   :  { %v1540_v46 = vpop.permute.xlu0 %1539  ;;  %v1534_v61 = vpop.permute.xlu1 %1533 }
 0x7d6   :  { %2918 = vmatpush3.xpose.msk.msra.mxu0 %vm279_vm2, %v1540_v46  ;;  %v3177_v46 = vld [vmem:[%s4167_s1 + $0x20] sm:$0xff] }
 0x7d7   :  { %2959 = vmatprep.subr.mxu0 %v3183_v35 }
 0x7d9   :  { %v1532_v54 = vpop.permute.xlu0 %1531  ;;  %v1538_v56 = vpop.permute.xlu1 %1537 }
 0x7db   :  { %v3120_v47 = vpop.eup %3119 }
 0x7dc   :  { %v1296_v48 = vmul.f32 %v3120_v47, %v3110_v22 }
 0x7dd   :  { %v1536_v3 = vpop.permute.xlu0 %1535 }
 0x7de   :  { %2887 = vmatmul.mubr.msk.f32.gmra.mxu0 %vm400_vm3, %v1296_v48 }
 0x7df   :  { %v3122_v49 = vpop.eup %3121  ;;  %2889 = vmatprep.mubr.msk.f32.mxu0 %vm3184_vm1, %v3183_v35 }
 0x7e0   :  { %v1297_v55 = vmul.f32 %v3122_v49, %v3112_v29  ;;  %v1080_v49 = vadd.f32 %v3737_v59, %v3747_v14 }
 0x7e2   :  { %2890 = vmatmul.mubr.msk.f32.gmra.mxu0 %vm400_vm3, %v1297_v55 }
 0x7e3   :  { %2919 = vmatprep.mubr.msk.f32.mxu0 %vm3184_vm1, %v3183_v35 }
 0x7e6   :  { %2920 = vmatmul.mubr.msk.f32.vlgmr.msra.gmra.mxu0 %vm279_vm2, %v1530_v51 }
 0x7e7   :  { %2922 = vmatprep.mubr.msk.f32.mxu0 %vm3184_vm1, %v3183_v35 }
 0x7ea   :  { %2923 = vmatmul.mubr.msk.f32.gmra.mxu0 %vm279_vm2, %v1532_v54  ;;  %v1085_v54 = vadd.f32 %v3739_v6, %v3749_v16 }
 0x7eb   :  { %2925 = vmatprep.mubr.msk.f32.mxu0 %vm3184_vm1, %v3183_v35 }
 0x7ee   :  { %2926 = vmatmul.mubr.msk.f32.gmra.mxu0 %vm279_vm2, %v1534_v61 }
 0x7ef   :  { %2928 = vmatprep.mubr.msk.f32.mxu0 %vm3184_vm1, %v3183_v35 }
 0x7f2   :  { %2929 = vmatmul.mubr.msk.f32.gmra.mxu0 %vm279_vm2, %v1536_v3 }
 0x7f3   :  { %2931 = vmatprep.mubr.msk.f32.mxu0 %vm3184_vm1, %v3183_v35 }
 0x7f6   :  { %2932 = vmatmul.mubr.msk.f32.gmra.mxu0 %vm279_vm2, %v1538_v56 }
 0x7f7   :  { %2961 = vmatprep.mubr.msk.f32.mxu0 %vm3184_vm1, %v3183_v35 }
 0x865   :  { %v1394_v57 = vpop.f32.mrf.mxu0 }
 0x866   :  { %2895 = vmatmul.mubr.msk.f32.vlgmr.msra.gmra.mxu1 %vm279_vm2, %v1394_v57 }
 0x867   :  { %v2879_v58 = vpop.f32.mrf.mxu0  ;;  %2897 = vmatprep.mubr.msk.f32.mxu1 %vm3184_vm1, %v3183_v35 }
 0x869   :  { %v1399_v60 = vpop.f32.mrf.mxu0 }
 0x86a   :  { %2898 = vmatmul.mubr.msk.f32.gmra.mxu1 %vm279_vm2, %v1399_v60 }
 0x86b   :  { %v2882_v62 = vpop.f32.mrf.mxu0  ;;  %2900 = vmatprep.mubr.msk.f32.mxu1 %vm3184_vm1, %v3183_v35 }
 0x86d   :  { %v1404_v9 = vpop.f32.mrf.mxu0 }
 0x86e   :  { %2901 = vmatmul.mubr.msk.f32.gmra.mxu1 %vm279_vm2, %v1404_v9 }
 0x86f   :  { %v2885_v63 = vpop.f32.mrf.mxu0  ;;  %2903 = vmatprep.mubr.msk.f32.mxu1 %vm3184_vm1, %v3183_v35 }
 0x89e   :  { %v1409_v0 = vpop.f32.mrf.mxu0 }
 0x89f   :  { %2904 = vmatmul.mubr.msk.f32.gmra.mxu1 %vm279_vm2, %v1409_v0 }
 0x8a0   :  { %v2888_v2 = vpop.f32.mrf.mxu0  ;;  %2906 = vmatprep.mubr.msk.f32.mxu1 %vm3184_vm1, %v3183_v35 }
 0x8a2   :  { %v1414_v53 = vpop.f32.mrf.mxu0 }
 0x8a3   :  { %2907 = vmatmul.mubr.msk.f32.gmra.mxu1 %vm279_vm2, %v1414_v53 }
 0x8a4   :  { %v2891_v4 = vpop.f32.mrf.mxu0  ;;  %2944 = vmatprep.mubr.msk.f32.mxu1 %vm3184_vm1, %v3183_v35 }
 0x8a6   :  { %v1635_v5 = vpop.f32.mrf.mxu0 }
 0x8a7   :  { %v1659_v1 = vmul.f32 0.35355338, %v1635_v5 }
 0x8a8   :  { %v2921_v8 = vpop.f32.mrf.mxu0 }
 0x8a9   :  { %v1664_v13 = vadd.f32 %v3173_v11, %v1659_v1 }
 0x8aa   :  { %v1640_v15 = vpop.f32.mrf.mxu0 }
 0x8ab   :  { %v1660_v17 = vmul.f32 0.35355338, %v1640_v15  ;;  %v1669_v19 = vsel %vm400_vm3, %v1664_v13, -inf }
 0x8ac   :  { %1670 = vmax.xlane.f32.xlu0 %v1669_v19  ;;  %v2924_v22 = vpop.f32.mrf.mxu0 }
 0x8ad   :  { %v1665_v29 = vadd.f32 %v3174_v26, %v1660_v17 }
 0x8ae   :  { %v1645_v30 = vpop.f32.mrf.mxu0 }
 0x8af   :  { %v1661_v31 = vmul.f32 0.35355338, %v1645_v30  ;;  %v1672_v32 = vsel %vm400_vm3, %v1665_v29, -inf }
 0x8b0   :  { %1673 = vmax.xlane.f32.xlu1 %v1672_v32  ;;  %v2927_v33 = vpop.f32.mrf.mxu0  ;;  %v1095_v32 = vadd.f32 %v3743_v10, %v3753_v20  ;;  %v1844_v10 = vld [vmem:[%s4168_s6 + $0x18] sm:$0xff] }
 0x8b1   :  { %v1666_v36 = vadd.f32 %v3175_v34, %v1661_v31  ;;  %2960 = vmatpush3.msra.mxu0 %v1844_v10 }
 0x8b2   :  { %v1650_v37 = vpop.f32.mrf.mxu0  ;;  %2999 = vmatprep.subr.mxu0 %v3183_v35 }
 0x8b3   :  { %v1662_v38 = vmul.f32 0.35355338, %v1650_v37  ;;  %v1675_v39 = vsel %vm400_vm3, %v1666_v36, -inf  ;;  %v1100_v37 = vadd.f32 %v3745_v12, %v3755_v23 }
 0x8b4   :  { %1676 = vmax.xlane.f32.xlu0 %v1675_v39  ;;  %v2930_v40 = vpop.f32.mrf.mxu0 }
 0x8b5   :  { %v1667_v43 = vadd.f32 %v3176_v41, %v1662_v38 }
 0x8b6   :  { %v1655_v42 = vpop.f32.mrf.mxu0 }
 0x8b7   :  { %v1663_v44 = vmul.f32 0.35355338, %v1655_v42  ;;  %v1678_v45 = vsel %vm400_vm3, %v1667_v43, -inf }
 0x8b8   :  { %1679 = vmax.xlane.f32.xlu0 %v1678_v45  ;;  %v2933_v50 = vpop.f32.mrf.mxu0 }
 0x8b9   :  { %v1668_v47 = vadd.f32 %v3177_v46, %v1663_v44 }
 0x8bb   :  { %v1681_v48 = vsel %vm400_vm3, %v1668_v47, -inf }
 0x8bc   :  { %1682 = vmax.xlane.f32.xlu0 %v1681_v48 }
 0x8c1   :  { %1730 = vrot.lane.b32.xlu1 %v3367_v21, %s3195_s16 }
 0x8c5   :  { %1728 = vrot.lane.b32.xlu1 %v3370_v24, %s3195_s16  ;;  %v1090_v24 = vadd.f32 %v3741_v7, %v3751_v18 }
 0x8d2   :  { %1732 = vrot.lane.b32.xlu0 %v3372_v25, %s3195_s16 }
 0x926   :  { %v1500_v55 = vpop.f32.mrf.mxu1 }
 0x927   :  { %v3874_v51 = vadd.f32 %v1500_v55, %v1080_v49 }
 0x928   :  { %v2896_v52 = vpop.f32.mrf.mxu1 }
 0x92a   :  { %v1505_v61 = vpop.f32.mrf.mxu1 }
 0x92b   :  { %v3878_v3 = vadd.f32 %v1505_v61, %v1085_v54 }
 0x92c   :  { %v2899_v21 = vpop.f32.mrf.mxu1 }
 0x92e   :  { %v1510_v56 = vpop.f32.mrf.mxu1 }
 0x92f   :  { %v3882_v57 = vadd.f32 %v1510_v56, %v1090_v24 }
 0x930   :  { %v2902_v25 = vpop.f32.mrf.mxu1 }
 0x935   :  { %v1671_v58 = vpop.xlane.xlu0 %1670 }
 0x936   :  { %v1684_v59 = vsub.f32 %v1664_v13, %v1671_v58 }
 0x938   :  { %v1689_v14 = vmul.f32 1.442695, %v1684_v59 }
 0x939   :  { %v1674_v60 = vpop.xlane.xlu1 %1673 }
 0x93a   :  { %3123 = vpow2.f32 %v1689_v14  ;;  %v1685_v62 = vsub.f32 %v1665_v29, %v1674_v60 }
 0x93c   :  { %v1691_v9 = vmul.f32 1.442695, %v1685_v62 }
 0x93d   :  { %v1677_v63 = vpop.xlane.xlu0 %1676  ;;  %v1731_v5 = vpop.permute.xlu1 %1730 }
 0x93e   :  { %3125 = vpow2.f32 %v1691_v9  ;;  %v1686_v6 = vsub.f32 %v1666_v36, %v1677_v63  ;;  %v2535_v63 = vld [vmem:[%s4169_s7] ss:$0 sm:$0xff] }
 0x940   :  { %v1693_v16 = vmul.f32 1.442695, %v1686_v6 }
 0x941   :  { %v1680_v0 = vpop.xlane.xlu0 %1679  ;;  %v1729_v17 = vpop.permute.xlu1 %1728 }
 0x942   :  { %3127 = vpow2.f32 %v1693_v16  ;;  %v1687_v2 = vsub.f32 %v1667_v43, %v1680_v0  ;;  %v3178_v16 = vld [vmem:[%s4162_s0] sm:$0xff] }
 0x944   :  { %v1695_v53 = vmul.f32 1.442695, %v1687_v2 }
 0x945   :  { %v1683_v7 = vpop.xlane.xlu0 %1682 }
 0x946   :  { %3129 = vpow2.f32 %v1695_v53  ;;  %v1688_v18 = vsub.f32 %v1668_v47, %v1683_v7 }
 0x947   :  { %v3124_v4 = vpop.eup %3123 }
 0x948   :  { %v1697_v1 = vmul.f32 1.442695, %v1688_v18  ;;  %v1699_v8 = vsel %vm400_vm3, %v3124_v4, 0.0 }
 0x949   :  { %1700 = vadd.xlane.f32.xlu1 %v1699_v8  ;;  %v1733_v11 = vpop.permute.xlu0 %1732 }
 0x94a   :  { %3131 = vpow2.f32 %v1697_v1  ;;  %2935 = vmatpush3.msra.mxu1 %v1733_v11 }
 0x94b   :  { %v3126_v13 = vpop.eup %3125  ;;  %2936 = vmatprep.subr.mxu1 %v3183_v35 }
 0x94c   :  { %2937 = vmatpush3.msra.mxu1 %v1731_v5  ;;  %v1702_v15 = vsel %vm400_vm3, %v3126_v13, 0.0 }
 0x94d   :  { %1703 = vadd.xlane.f32.xlu0 %v1702_v15  ;;  %2938 = vmatprep.subr.mxu1 %v3183_v35 }
 0x94e   :  { %2939 = vmatpush3.msra.mxu1 %v1729_v17 }
 0x94f   :  { %v3128_v19 = vpop.eup %3127  ;;  %2940 = vmatprep.subr.mxu1 %v3183_v35 }
 0x950   :  { %v1705_v22 = vsel %vm400_vm3, %v3128_v19, 0.0 }
 0x951   :  { %1706 = vadd.xlane.f32.xlu1 %v1705_v22 }
 0x953   :  { %v3130_v26 = vpop.eup %3129 }
 0x954   :  { %v1708_v29 = vsel %vm400_vm3, %v3130_v26, 0.0 }
 0x955   :  { %1709 = vadd.xlane.f32.xlu0 %v1708_v29 }
 0x957   :  { %v3132_v30 = vpop.eup %3131 }
 0x958   :  { %v1711_v31 = vsel %vm400_vm3, %v3132_v30, 0.0 }
 0x959   :  { %1712 = vadd.xlane.f32.xlu1 %v1711_v31 }
 0x95f   :  { %v1515_v33 = vpop.f32.mrf.mxu1 }
 0x960   :  { %v3894_v34 = vadd.f32 %v1515_v33, %v1095_v32 }
 0x961   :  { %v2905_v36 = vpop.f32.mrf.mxu1 }
 0x963   :  { %v1520_v38 = vpop.f32.mrf.mxu1 }
 0x964   :  { %v3898_v39 = vadd.f32 %v1520_v38, %v1100_v37 }
 0x965   :  { %v2908_v40 = vpop.f32.mrf.mxu1 }
 0x96a   :  { %1726 = vrot.lane.b32.xlu1 %v3378_v28, %s3195_s16 }
 0x96b   :  { %1724 = vrot.lane.b32.xlu0 %v3376_v27, %s3195_s16 }
 0x9d2   :  { %v1701_v20 = vpop.xlane.xlu1 %1700 }
 0x9d3   :  { %3133 = vrcp.f32 %v1701_v20 }
 0x9d6   :  { %v1704_v12 = vpop.xlane.xlu0 %1703 }
 0x9d7   :  { %3135 = vrcp.f32 %v1704_v12 }
 0x9da   :  { %v1707_v23 = vpop.xlane.xlu1 %1706 }
 0x9db   :  { %3137 = vrcp.f32 %v1707_v23 }
 0x9de   :  { %v1710_v41 = vpop.xlane.xlu0 %1709 }
 0x9df   :  { %3139 = vrcp.f32 %v1710_v41 }
 0x9e0   :  { %v3134_v28 = vpop.eup %3133 }
 0x9e1   :  { %v1719_v27 = vmul.f32 %v3134_v28, %v3124_v4 }
 0x9e2   :  { %v1713_v43 = vpop.xlane.xlu1 %1712  ;;  %v1725_v44 = vpop.permute.xlu0 %1724 }
 0x9e3   :  { %3141 = vrcp.f32 %v1713_v43 }
 0x9e4   :  { %v3136_v45 = vpop.eup %3135 }
 0x9e5   :  { %v1720_v50 = vmul.f32 %v3136_v45, %v3126_v13 }
 0x9e6   :  { %v1727_v42 = vpop.permute.xlu1 %1726 }
 0x9e7   :  { %2941 = vmatpush3.msra.mxu1 %v1727_v42 }
 0x9e8   :  { %2942 = vmatprep.subr.mxu1 %v3183_v35  ;;  %v3138_v46 = vpop.eup %3137 }
 0x9e9   :  { %2943 = vmatpush3.msra.mxu1 %v1725_v44  ;;  %v1721_v47 = vmul.f32 %v3138_v46, %v3128_v19 }
 0x9ea   :  { %2945 = vmatmul.mubr.msk.f32.vlgmr.msra.gmra.mxu1 %vm400_vm3, %v1719_v27  ;;  %2976 = vmatprep.subr.mxu1 %v3183_v35 }
 0x9eb   :  { %2947 = vmatprep.mubr.msk.f32.mxu1 %vm3184_vm1, %v3183_v35 }
 0x9ec   :  { %v3140_v48 = vpop.eup %3139 }
 0x9ed   :  { %v1722_v49 = vmul.f32 %v3140_v48, %v3130_v26 }
 0x9ee   :  { %2948 = vmatmul.mubr.msk.f32.gmra.mxu1 %vm400_vm3, %v1720_v50 }
 0x9ef   :  { %2950 = vmatprep.mubr.msk.f32.mxu1 %vm3184_vm1, %v3183_v35 }
 0x9f0   :  { %v3142_v55 = vpop.eup %3141 }
 0x9f1   :  { %v1723_v52 = vmul.f32 %v3142_v55, %v3132_v30 }
 0x9f2   :  { %2951 = vmatmul.mubr.msk.f32.gmra.mxu1 %vm400_vm3, %v1721_v47 }
 0x9f3   :  { %2953 = vmatprep.mubr.msk.f32.mxu1 %vm3184_vm1, %v3183_v35 }
 0x9f6   :  { %2954 = vmatmul.mubr.msk.f32.gmra.mxu1 %vm400_vm3, %v1722_v49 }
 0x9f7   :  { %2956 = vmatprep.mubr.msk.f32.mxu1 %vm3184_vm1, %v3183_v35 }
 0x9fa   :  { %2957 = vmatmul.mubr.msk.f32.gmra.mxu1 %vm400_vm3, %v1723_v52 }
 0x9fb   :  { %2984 = vmatprep.mubr.msk.f32.mxu1 %vm3184_vm1, %v3183_v35 }
 0xaaa   :  { %v1820_v54 = vpop.f32.mrf.mxu1 }
 0xaab   :  { %2962 = vmatmul.mubr.msk.f32.vlgmr.msra.gmra.mxu0 %vm279_vm2, %v1820_v54 }
 0xaac   :  { %v2946_v61 = vpop.f32.mrf.mxu1  ;;  %2964 = vmatprep.mubr.msk.f32.mxu0 %vm3184_vm1, %v3183_v35 }
 0xaae   :  { %v1825_v21 = vpop.f32.mrf.mxu1 }
 0xaaf   :  { %2965 = vmatmul.mubr.msk.f32.gmra.mxu0 %vm279_vm2, %v1825_v21 }
 0xab0   :  { %v2949_v24 = vpop.f32.mrf.mxu1  ;;  %2967 = vmatprep.mubr.msk.f32.mxu0 %vm3184_vm1, %v3183_v35 }
 0xab2   :  { %v1830_v56 = vpop.f32.mrf.mxu1 }
 0xab3   :  { %2968 = vmatmul.mubr.msk.f32.gmra.mxu0 %vm279_vm2, %v1830_v56 }
 0xab4   :  { %v2952_v25 = vpop.f32.mrf.mxu1  ;;  %2970 = vmatprep.mubr.msk.f32.mxu0 %vm3184_vm1, %v3183_v35 }
 0xab6   :  { %v1835_v58 = vpop.f32.mrf.mxu1 }
 0xab7   :  { %2971 = vmatmul.mubr.msk.f32.gmra.mxu0 %vm279_vm2, %v1835_v58 }
 0xab8   :  { %v2955_v59 = vpop.f32.mrf.mxu1  ;;  %2973 = vmatprep.mubr.msk.f32.mxu0 %vm3184_vm1, %v3183_v35 }
 0xaba   :  { %v1840_v14 = vpop.f32.mrf.mxu1 }
 0xabb   :  { %2974 = vmatmul.mubr.msk.f32.gmra.mxu0 %vm279_vm2, %v1840_v14  ;;  %v2064_v14 = vld [vmem:[%s4170_s10 + $0x18] sm:$0xff] }
 0xabc   :  { %v2958_v60 = vpop.f32.mrf.mxu1  ;;  %3015 = vmatprep.mubr.msk.f32.mxu0 %vm3184_vm1, %v3183_v35  ;;  %2977 = vmatpush3.msra.mxu1 %v2064_v14 }
 0xabd   :  { %2978 = vmatprep.subr.mxu1 %v3183_v35  ;;  %v2063_v60 = vld [vmem:[%s4170_s10 + $0x10] sm:$0xff] }
 0xabe   :  { %2979 = vmatpush3.msra.mxu1 %v2063_v60 }
 0xabf   :  { %2980 = vmatprep.subr.mxu1 %v3183_v35 }
 0xb6b   :  { %v1926_v62 = vpop.f32.mrf.mxu0 }
 0xb6c   :  { %v1950_v9 = vadd.f32 %v1926_v62, %v3874_v51  ;;  %v3179_v51 = vld [vmem:[%s4162_s0 + $0x8] sm:$0xff] }
 0xb6d   :  { %v2963_v6 = vpop.f32.mrf.mxu0  ;;  %v2062_v62 = vld [vmem:[%s4170_s10 + $0x8] sm:$0xff] }
 0xb6e   :  { %v1955_v0 = vadd.f32 %v3178_v16, %v1950_v9  ;;  %v2061_v9 = vld [vmem:[%s4170_s10] sm:$0xff]  ;;  %2981 = vmatpush3.msra.mxu1 %v2062_v62 }
 0xb6f   :  { %v1931_v2 = vpop.f32.mrf.mxu0  ;;  %2982 = vmatprep.subr.mxu1 %v3183_v35 }
 0xb70   :  { %v3947_v53 = vadd.f32 %v2535_v63, %v1955_v0  ;;  %v1951_v7 = vadd.f32 %v1931_v2, %v3878_v3  ;;  %v3180_v3 = vld [vmem:[%s4162_s0 + $0x10] sm:$0xff]  ;;  %2983 = vmatpush3.msra.mxu1 %v2061_v9 }
 0xb71   :  { %v2966_v18 = vpop.f32.mrf.mxu0 }
 0xb72   :  { %v1956_v4 = vadd.f32 %v3179_v51, %v1951_v7  ;;  %v1974_v5 = vsel %vm59_vm0, %v3947_v53, 0.0 }
 0xb73   :  { %1975 = vadd.xlane.f32.xlu1 %v1974_v5  ;;  %v1936_v1 = vpop.f32.mrf.mxu0 }
 0xb74   :  { %v3955_v8 = vadd.f32 %v2535_v63, %v1956_v4  ;;  %v1952_v11 = vadd.f32 %v1936_v1, %v3882_v57  ;;  %v3181_v57 = vld [vmem:[%s4162_s0 + $0x18] sm:$0xff] }
 0xb75   :  { %v2969_v13 = vpop.f32.mrf.mxu0 }
 0xb76   :  { %v1957_v15 = vadd.f32 %v3180_v3, %v1952_v11  ;;  %v1977_v17 = vsel %vm59_vm0, %v3955_v8, 0.0 }
 0xb77   :  { %1978 = vadd.xlane.f32.xlu0 %v1977_v17  ;;  %v1941_v19 = vpop.f32.mrf.mxu0  ;;  %v2536_v17 = vld [vmem:[%s4171_s8] ss:$0 sm:$0xff] }
 0xb78   :  { %v3963_v22 = vadd.f32 %v2535_v63, %v1957_v15  ;;  %v1953_v26 = vadd.f32 %v1941_v19, %v3894_v34  ;;  %v3182_v34 = vld [vmem:[%s4162_s0 + $0x20] sm:$0xff] }
 0xb79   :  { %v2972_v29 = vpop.f32.mrf.mxu0 }
 0xb7a   :  { %v1958_v30 = vadd.f32 %v3181_v57, %v1953_v26  ;;  %v1980_v31 = vsel %vm59_vm0, %v3963_v22, 0.0  ;;  %v2537_v29 = vld [vmem:[%s4172_s9] ss:$0 sm:$0xff] }
 0xb7b   :  { %1981 = vadd.xlane.f32.xlu0 %v1980_v31  ;;  %v1946_v32 = vpop.f32.mrf.mxu0 }
 0xb7c   :  { %v3971_v33 = vadd.f32 %v2535_v63, %v1958_v30  ;;  %v1954_v36 = vadd.f32 %v1946_v32, %v3898_v39 }
 0xb7d   :  { %v2975_v37 = vpop.f32.mrf.mxu0 }
 0xb7e   :  { %v1959_v38 = vadd.f32 %v3182_v34, %v1954_v36  ;;  %v1983_v40 = vsel %vm59_vm0, %v3971_v33, 0.0 }
 0xb7f   :  { %1984 = vadd.xlane.f32.xlu0 %v1983_v40 }
 0xb80   :  { %v3979_v10 = vadd.f32 %v2535_v63, %v1959_v38 }
 0xb82   :  { %v1986_v20 = vsel %vm59_vm0, %v3979_v10, 0.0 }
 0xb83   :  { %1987 = vadd.xlane.f32.xlu1 %v1986_v20 }
 0xbfc   :  { %v1976_v12 = vpop.xlane.xlu1 %1975 }
 0xbfd   :  { %v1989_v23 = vmul.f32 0.03125, %v1976_v12 }
 0xbff   :  { %v1994_v39 = vsub.f32 %v3947_v53, %v1989_v23 }
 0xc00   :  { %v1979_v41 = vpop.xlane.xlu0 %1978 }
 0xc01   :  { %v1990_v43 = vmul.f32 0.03125, %v1979_v41  ;;  %v1999_v28 = vmul.f32 %v1994_v39, %v1994_v39 }
 0xc03   :  { %v3985_v42 = vsub.f32 %v3955_v8, %v1990_v43  ;;  %v2004_v27 = vsel %vm59_vm0, %v1999_v28, 0.0 }
 0xc04   :  { %v1982_v44 = vpop.xlane.xlu0 %1981  ;;  %2005 = vadd.xlane.f32.xlu0 %v2004_v27 }
 0xc05   :  { %v1991_v45 = vmul.f32 0.03125, %v1982_v44  ;;  %v2000_v50 = vmul.f32 %v3985_v42, %v3985_v42  ;;  %v2319_v44 = vld [vmem:[%s4173_s12 + $0x38] sm:$0xff] }
 0xc06   :  { %3000 = vmatpush3.msra.mxu0 %v2319_v44 }
 0xc07   :  { %v3991_v46 = vsub.f32 %v3963_v22, %v1991_v45  ;;  %v2007_v47 = vsel %vm59_vm0, %v2000_v50, 0.0  ;;  %3001 = vmatprep.subr.mxu0 %v3183_v35  ;;  %v2318_v45 = vld [vmem:[%s4173_s12 + $0x30] sm:$0xff]  ;;  %v2317_v50 = vld [vmem:[%s4173_s12 + $0x28] sm:$0xff] }
 0xc08   :  { %v1985_v48 = vpop.xlane.xlu0 %1984  ;;  %2008 = vadd.xlane.f32.xlu1 %v2007_v47  ;;  %3002 = vmatpush3.msra.mxu0 %v2318_v45  ;;  %v2315_v47 = vld [vmem:[%s4173_s12 + $0x18] sm:$0xff] }
 0xc09   :  { %v1992_v49 = vmul.f32 0.03125, %v1985_v48  ;;  %v2001_v55 = vmul.f32 %v3991_v46, %v3991_v46  ;;  %3003 = vmatprep.subr.mxu0 %v3183_v35  ;;  %v2314_v48 = vld [vmem:[%s4173_s12 + $0x10] sm:$0xff] }
 0xc0a   :  { %3004 = vmatpush3.msra.mxu0 %v2317_v50 }
 0xc0b   :  { %v3997_v52 = vsub.f32 %v3971_v33, %v1992_v49  ;;  %v2010_v54 = vsel %vm59_vm0, %v2001_v55, 0.0  ;;  %3005 = vmatprep.subr.mxu0 %v3183_v35  ;;  %v2313_v49 = vld [vmem:[%s4173_s12 + $0x8] sm:$0xff]  ;;  %v2312_v55 = vld [vmem:[%s4173_s12] sm:$0xff] }
 0xc0c   :  { %2011 = vadd.xlane.f32.xlu0 %v2010_v54  ;;  %v1988_v61 = vpop.xlane.xlu1 %1987 }
 0xc0d   :  { %v1993_v21 = vmul.f32 0.03125, %v1988_v61  ;;  %v2002_v24 = vmul.f32 %v3997_v52, %v3997_v52 }
 0xc0f   :  { %v4003_v56 = vsub.f32 %v3979_v10, %v1993_v21  ;;  %v2013_v25 = vsel %vm59_vm0, %v2002_v24, 0.0 }
 0xc10   :  { %2014 = vadd.xlane.f32.xlu1 %v2013_v25 }
 0xc11   :  { %v2003_v58 = vmul.f32 %v4003_v56, %v4003_v56 }
 0xc13   :  { %v2016_v59 = vsel %vm59_vm0, %v2003_v58, 0.0 }
 0xc14   :  { %2017 = vadd.xlane.f32.xlu0 %v2016_v59 }
 0xc8d   :  { %v2006_v63 = vpop.xlane.xlu0 %2005 }
 0xc8e   :  { %v2019_v6 = vmul.f32 0.03125, %v2006_v63 }
 0xc90   :  { %v2024_v16 = vadd.f32 1e-05, %v2019_v6 }
 0xc91   :  { %v2009_v0 = vpop.xlane.xlu1 %2008 }
 0xc92   :  { %3143 = vrsqrt.f32 %v2024_v16  ;;  %v2020_v2 = vmul.f32 0.03125, %v2009_v0 }
 0xc94   :  { %v2025_v7 = vadd.f32 1e-05, %v2020_v2 }
 0xc95   :  { %v2012_v18 = vpop.xlane.xlu0 %2011 }
 0xc96   :  { %3145 = vrsqrt.f32 %v2025_v7  ;;  %v2021_v51 = vmul.f32 0.03125, %v2012_v18 }
 0xc98   :  { %v2026_v4 = vadd.f32 1e-05, %v2021_v51 }
 0xc99   :  { %v2015_v5 = vpop.xlane.xlu1 %2014 }
 0xc9a   :  { %3147 = vrsqrt.f32 %v2026_v4  ;;  %v2022_v1 = vmul.f32 0.03125, %v2015_v5 }
 0xc9c   :  { %v2027_v11 = vadd.f32 1e-05, %v2022_v1 }
 0xc9d   :  { %v2018_v13 = vpop.xlane.xlu0 %2017 }
 0xc9e   :  { %3149 = vrsqrt.f32 %v2027_v11  ;;  %v2023_v3 = vmul.f32 0.03125, %v2018_v13 }
 0xc9f   :  { %v3144_v15 = vpop.eup %3143 }
 0xca0   :  { %v2034_v19 = vmul.f32 %v3144_v15, %v1994_v39  ;;  %v2028_v26 = vadd.f32 1e-05, %v2023_v3 }
 0xca2   :  { %v2045_v57 = vmul.f32 %v2536_v17, %v2034_v19  ;;  %3151 = vrsqrt.f32 %v2028_v26 }
 0xca3   :  { %v3146_v30 = vpop.eup %3145 }
 0xca4   :  { %v2056_v31 = vadd.f32 %v2537_v29, %v2045_v57  ;;  %v2035_v32 = vmul.f32 %v3146_v30, %v3985_v42 }
 0xca6   :  { %2985 = vmatmul.mubr.msk.f32.vlgmr.msra.gmra.mxu1 %vm59_vm0, %v2056_v31  ;;  %v2046_v36 = vmul.f32 %v2536_v17, %v2035_v32 }
 0xca7   :  { %v3148_v37 = vpop.eup %3147  ;;  %2987 = vmatprep.mubr.msk.f32.mxu1 %vm3184_vm1, %v3183_v35 }
 0xca8   :  { %v2057_v34 = vadd.f32 %v2537_v29, %v2046_v36  ;;  %v2036_v38 = vmul.f32 %v3148_v37, %v3991_v46  ;;  %v2316_v46 = vld [vmem:[%s4173_s12 + $0x20] sm:$0xff] }
 0xca9   :  { %3006 = vmatpush3.msra.mxu0 %v2316_v46 }
 0xcaa   :  { %2988 = vmatmul.mubr.msk.f32.gmra.mxu1 %vm59_vm0, %v2057_v34  ;;  %v2047_v40 = vmul.f32 %v2536_v17, %v2036_v38  ;;  %3007 = vmatprep.subr.mxu0 %v3183_v35 }
 0xcab   :  { %v3150_v20 = vpop.eup %3149  ;;  %2990 = vmatprep.mubr.msk.f32.mxu1 %vm3184_vm1, %v3183_v35  ;;  %3008 = vmatpush3.msra.mxu0 %v2315_v47 }
 0xcac   :  { %v2058_v12 = vadd.f32 %v2537_v29, %v2047_v40  ;;  %v2037_v23 = vmul.f32 %v3150_v20, %v3997_v52  ;;  %3009 = vmatprep.subr.mxu0 %v3183_v35  ;;  %v2538_v52 = vld [vmem:[%s4174_s11] ss:$0 sm:$0xff] }
 0xcad   :  { %3010 = vmatpush3.msra.mxu0 %v2314_v48 }
 0xcae   :  { %2991 = vmatmul.mubr.msk.f32.gmra.mxu1 %vm59_vm0, %v2058_v12  ;;  %v2048_v39 = vmul.f32 %v2536_v17, %v2037_v23  ;;  %3011 = vmatprep.subr.mxu0 %v3183_v35 }
 0xcaf   :  { %v3152_v41 = vpop.eup %3151  ;;  %2993 = vmatprep.mubr.msk.f32.mxu1 %vm3184_vm1, %v3183_v35  ;;  %3012 = vmatpush3.msra.mxu0 %v2313_v49 }
 0xcb0   :  { %v2059_v43 = vadd.f32 %v2537_v29, %v2048_v39  ;;  %v2038_v28 = vmul.f32 %v3152_v41, %v4003_v56  ;;  %3013 = vmatprep.subr.mxu0 %v3183_v35 }
 0xcb1   :  { %3014 = vmatpush3.msra.mxu0 %v2312_v55 }
 0xcb2   :  { %2994 = vmatmul.mubr.msk.f32.gmra.mxu1 %vm59_vm0, %v2059_v43  ;;  %v2049_v42 = vmul.f32 %v2536_v17, %v2038_v28 }
 0xcb3   :  { %2996 = vmatprep.mubr.msk.f32.mxu1 %vm3184_vm1, %v3183_v35 }
 0xcb4   :  { %v2060_v27 = vadd.f32 %v2537_v29, %v2049_v42 }
 0xcb6   :  { %2997 = vmatmul.mubr.msk.f32.gmra.mxu1 %vm59_vm0, %v2060_v27 }
 0xd66   :  { %v2153_v54 = vpop.f32.mrf.mxu1 }
 0xd67   :  { %v4081_v61 = vadd.f32 %v2538_v52, %v2153_v54 }
 0xd68   :  { %v2986_v21 = vpop.f32.mrf.mxu1 }
 0xd69   :  { %v4084_v24 = vmul.f32 0.70710677, %v4081_v61 }
 0xd6a   :  { %v2158_v56 = vpop.f32.mrf.mxu1 }
 0xd6b   :  { %v2187_v25 = vand.u32 2147483647, %v4084_v24  ;;  %v4087_v58 = vadd.f32 %v2538_v52, %v2158_v56  ;;  %vm2287_vm4 = vcmp.lt.f32.partialorder %v4084_v24, 0.0 }
 0xd6c   :  { %v2989_v59 = vpop.f32.mrf.mxu1 }
 0xd6d   :  { %v2192_v14 = vmul.f32 0.3275911, %v2187_v25  ;;  %v4090_v60 = vmul.f32 0.70710677, %v4087_v58  ;;  %v2257_v3 = vsub.f32 0.0, %v2187_v25 }
 0xd6e   :  { %v2163_v62 = vpop.f32.mrf.mxu1 }
 0xd6f   :  { %v2197_v9 = vadd.f32 1.0, %v2192_v14  ;;  %v2188_v63 = vand.u32 2147483647, %v4090_v60  ;;  %v4093_v6 = vadd.f32 %v2538_v52, %v2163_v62  ;;  %v2262_v30 = vmul.f32 %v2257_v3, %v2187_v25 }
 0xd70   :  { %v2992_v16 = vpop.f32.mrf.mxu1  ;;  %vm2288_vm6 = vcmp.lt.f32.partialorder %v4090_v60, 0.0 }
 0xd71   :  { %3153 = vrcp.f32 %v2197_v9  ;;  %v2193_v0 = vmul.f32 0.3275911, %v2188_v63  ;;  %v4096_v2 = vmul.f32 0.70710677, %v4093_v6  ;;  %v2258_v31 = vsub.f32 0.0, %v2188_v63 }
 0xd72   :  { %v2168_v7 = vpop.f32.mrf.mxu1  ;;  %v2267_v40 = vmul.f32 1.442695, %v2262_v30 }
 0xd73   :  { %v2198_v18 = vadd.f32 1.0, %v2193_v0  ;;  %v4098_v51 = vadd.f32 %v2538_v52, %v2168_v7  ;;  %v2189_v4 = vand.u32 2147483647, %v4096_v2  ;;  %v2263_v20 = vmul.f32 %v2258_v31, %v2188_v63 }
 0xd74   :  { %v2995_v5 = vpop.f32.mrf.mxu1  ;;  %vm2289_vm7 = vcmp.lt.f32.partialorder %v4096_v2, 0.0 }
 0xd75   :  { %3155 = vrcp.f32 %v2198_v18  ;;  %v4102_v1 = vmul.f32 0.70710677, %v4098_v51  ;;  %v2194_v11 = vmul.f32 0.3275911, %v2189_v4  ;;  %v2259_v23 = vsub.f32 0.0, %v2189_v4 }
 0xd76   :  { %v2173_v13 = vpop.f32.mrf.mxu1  ;;  %v2269_v27 = vmul.f32 1.442695, %v2263_v20  ;;  %v2180_v2 = vmul.f32 0.5, %v4098_v51  ;;  %v2544_v51 = vld [vmem:[%s4175_s13] ss:$0 sm:$0xff] }
 0xd77   :  { %v2190_v15 = vand.u32 2147483647, %v4102_v1  ;;  %v4105_v17 = vadd.f32 %v2538_v52, %v2173_v13  ;;  %v2199_v19 = vadd.f32 1.0, %v2194_v11  ;;  %v2264_v44 = vmul.f32 %v2259_v23, %v2189_v4 }
 0xd78   :  { %v2998_v26 = vpop.f32.mrf.mxu1  ;;  %vm2290_vm8 = vcmp.lt.f32.partialorder %v4102_v1, 0.0 }
 0xd79   :  { %v2195_v29 = vmul.f32 0.3275911, %v2190_v15  ;;  %v4108_v57 = vmul.f32 0.70710677, %v4105_v17  ;;  %3157 = vrcp.f32 %v2199_v19  ;;  %v2260_v43 = vsub.f32 0.0, %v2190_v15 }
 0xd7a   :  { %v2271_v54 = vmul.f32 1.442695, %v2264_v44 }
 0xd7b   :  { %v2200_v32 = vadd.f32 1.0, %v2195_v29  ;;  %v2191_v36 = vand.u32 2147483647, %v4108_v57  ;;  %v2265_v46 = vmul.f32 %v2260_v43, %v2190_v15  ;;  %vm2291_vm9 = vcmp.lt.f32.partialorder %v4108_v57, 0.0 }
 0xd7d   :  { %3159 = vrcp.f32 %v2200_v32  ;;  %v2196_v37 = vmul.f32 0.3275911, %v2191_v36  ;;  %v2261_v47 = vsub.f32 0.0, %v2191_v36  ;;  %v2273_v14 = vmul.f32 1.442695, %v2265_v46 }
 0xd7e   :  { %v3154_v34 = vpop.eup %3153 }
 0xd7f   :  { %v2212_v38 = vmul.f32 1.0614054, %v3154_v34  ;;  %v2201_v12 = vadd.f32 1.0, %v2196_v37  ;;  %v2266_v62 = vmul.f32 %v2261_v47, %v2191_v36 }
 0xd81   :  { %v2217_v39 = vadd.f32 -1.4531521, %v2212_v38  ;;  %3161 = vrcp.f32 %v2201_v12  ;;  %v2275_v13 = vmul.f32 1.442695, %v2266_v62 }
 0xd82   :  { %v3156_v41 = vpop.eup %3155  ;;  %3163 = vpow2.f32 %v2267_v40 }
 0xd83   :  { %v2222_v28 = vmul.f32 %v3154_v34, %v2217_v39  ;;  %v2213_v42 = vmul.f32 1.0614054, %v3156_v41  ;;  %3165 = vpow2.f32 %v2269_v27 }
 0xd84   :  { %3167 = vpow2.f32 %v2271_v54 }
 0xd85   :  { %v2227_v45 = vadd.f32 1.4214138, %v2222_v28  ;;  %v2218_v50 = vadd.f32 -1.4531521, %v2213_v42  ;;  %3169 = vpow2.f32 %v2273_v14 }
 0xd86   :  { %v3158_v48 = vpop.eup %3157  ;;  %3171 = vpow2.f32 %v2275_v13 }
 0xd87   :  { %v2232_v49 = vmul.f32 %v3154_v34, %v2227_v45  ;;  %v2223_v55 = vmul.f32 %v3156_v41, %v2218_v50  ;;  %v2214_v52 = vmul.f32 1.0614054, %v3158_v48 }
 0xd89   :  { %v2237_v21 = vadd.f32 -0.28449672, %v2232_v49  ;;  %v2228_v56 = vadd.f32 1.4214138, %v2223_v55  ;;  %v2219_v59 = vadd.f32 -1.4531521, %v2214_v52 }
 0xd8a   :  { %v3160_v25 = vpop.eup %3159  ;;  %v2177_v49 = vmul.f32 0.5, %v4081_v61 }
 0xd8b   :  { %v2242_v9 = vmul.f32 %v3154_v34, %v2237_v21  ;;  %v2233_v63 = vmul.f32 %v3156_v41, %v2228_v56  ;;  %v2215_v16 = vmul.f32 1.0614054, %v3160_v25  ;;  %v2224_v0 = vmul.f32 %v3158_v48, %v2219_v59 }
 0xd8d   :  { %v2247_v7 = vadd.f32 0.2548296, %v2242_v9  ;;  %v2238_v18 = vadd.f32 -0.28449672, %v2233_v63  ;;  %v2220_v4 = vadd.f32 -1.4531521, %v2215_v16 }
 0xd8e   :  { %v3162_v5 = vpop.eup %3161  ;;  %v2229_v11 = vadd.f32 1.4214138, %v2224_v0  ;;  %v2178_v16 = vmul.f32 0.5, %v4087_v58  ;;  %v2179_v58 = vmul.f32 0.5, %v4093_v6 }
 0xd8f   :  { %v2252_v3 = vmul.f32 %v3154_v34, %v2247_v7  ;;  %v2243_v15 = vmul.f32 %v3156_v41, %v2238_v18  ;;  %v2225_v19 = vmul.f32 %v3160_v25, %v2220_v4  ;;  %v2216_v26 = vmul.f32 1.0614054, %v3162_v5  ;;  %v3164_v29 = vpop.eup %3163 }
 0xd90   :  { %v2234_v30 = vmul.f32 %v3158_v48, %v2229_v11  ;;  %v3166_v39 = vpop.eup %3165 }
 0xd91   :  { %v2277_v31 = vmul.f32 %v3164_v29, %v2252_v3  ;;  %v2248_v32 = vadd.f32 0.2548296, %v2243_v15  ;;  %v2230_v36 = vadd.f32 1.4214138, %v2225_v19  ;;  %v2221_v37 = vadd.f32 -1.4531521, %v2216_v26 }
 0xd92   :  { %v2239_v38 = vadd.f32 -0.28449672, %v2234_v30 }
 0xd93   :  { %v2282_v40 = vsub.f32 1.0, %v2277_v31  ;;  %v2253_v20 = vmul.f32 %v3156_v41, %v2248_v32  ;;  %v2235_v12 = vmul.f32 %v3160_v25, %v2230_v36  ;;  %v2226_v23 = vmul.f32 %v3162_v5, %v2221_v37  ;;  %v3168_v41 = vpop.eup %3167 }
 0xd94   :  { %v2244_v43 = vmul.f32 %v3158_v48, %v2239_v38  ;;  %v3170_v62 = vpop.eup %3169  ;;  %v2181_v36 = vmul.f32 0.5, %v4105_v17 }
 0xd95   :  { %v2292_v28 = vsub.f32 0.0, %v2282_v40  ;;  %v2278_v42 = vmul.f32 %v3166_v39, %v2253_v20  ;;  %v2240_v34 = vadd.f32 -0.28449672, %v2235_v12  ;;  %v2231_v27 = vadd.f32 1.4214138, %v2226_v23  ;;  %v3172_v11 = vpop.eup %3171 }
 0xd96   :  { %v2249_v44 = vadd.f32 0.2548296, %v2244_v43 }
 0xd97   :  { %v2297_v45 = vsel %vm2287_vm4, %v2292_v28, %v2282_v40  ;;  %v2283_v50 = vsub.f32 1.0, %v2278_v42  ;;  %v2245_v46 = vmul.f32 %v3160_v25, %v2240_v34  ;;  %v2236_v47 = vmul.f32 %v3162_v5, %v2231_v27 }
 0xd98   :  { %v2302_v55 = vadd.f32 1.0, %v2297_v45  ;;  %v2254_v52 = vmul.f32 %v3158_v48, %v2249_v44 }
 0xd99   :  { %v2293_v54 = vsub.f32 0.0, %v2283_v50  ;;  %v2250_v21 = vadd.f32 0.2548296, %v2245_v46  ;;  %v2241_v56 = vadd.f32 -0.28449672, %v2236_v47 }
 0xd9a   :  { %v2307_v59 = vmul.f32 %v2302_v55, %v2177_v49  ;;  %v2279_v14 = vmul.f32 %v3168_v41, %v2254_v52 }
 0xd9b   :  { %v2298_v24 = vsel %vm2288_vm6, %v2293_v54, %v2283_v50  ;;  %v2255_v9 = vmul.f32 %v3160_v25, %v2250_v21  ;;  %v2246_v63 = vmul.f32 %v3162_v5, %v2241_v56 }
 0xd9c   :  { %v2303_v0 = vadd.f32 1.0, %v2298_v24  ;;  %v2284_v7 = vsub.f32 1.0, %v2279_v14  ;;  %3016 = vmatmul.mubr.msk.f32.vlgmr.msra.gmra.mxu0 %vm2327_vm5, %v2307_v59 }
 0xd9d   :  { %v2280_v61 = vmul.f32 %v3170_v62, %v2255_v9  ;;  %v2251_v48 = vadd.f32 0.2548296, %v2246_v63  ;;  %3018 = vmatprep.mubr.msk.f32.mxu0 %vm3184_vm1, %v3183_v35 }
 0xd9e   :  { %v2308_v18 = vmul.f32 %v2303_v0, %v2178_v16  ;;  %v2294_v4 = vsub.f32 0.0, %v2284_v7 }
 0xd9f   :  { %v2285_v60 = vsub.f32 1.0, %v2280_v61  ;;  %v2256_v13 = vmul.f32 %v3162_v5, %v2251_v48 }
 0xda0   :  { %v2299_v25 = vsel %vm2289_vm7, %v2294_v4, %v2284_v7  ;;  %3019 = vmatmul.mubr.msk.f32.gmra.mxu0 %vm2327_vm5, %v2308_v18 }
 0xda1   :  { %v2304_v3 = vadd.f32 1.0, %v2299_v25  ;;  %v2295_v15 = vsub.f32 0.0, %v2285_v60  ;;  %v2281_v19 = vmul.f32 %v3172_v11, %v2256_v13  ;;  %3021 = vmatprep.mubr.msk.f32.mxu0 %vm3184_vm1, %v3183_v35 }
 0xda3   :  { %v2309_v26 = vmul.f32 %v2304_v3, %v2179_v58  ;;  %v2300_v29 = vsel %vm2290_vm8, %v2295_v15, %v2285_v60  ;;  %v2286_v30 = vsub.f32 1.0, %v2281_v19 }
 0xda4   :  { %v2305_v31 = vadd.f32 1.0, %v2300_v29 }
 0xda5   :  { %v2296_v5 = vsub.f32 0.0, %v2286_v30  ;;  %3022 = vmatmul.mubr.msk.f32.gmra.mxu0 %vm2327_vm5, %v2309_v26 }
 0xda6   :  { %v2310_v32 = vmul.f32 %v2305_v31, %v2180_v2  ;;  %3024 = vmatprep.mubr.msk.f32.mxu0 %vm3184_vm1, %v3183_v35 }
 0xda7   :  { %v2301_v6 = vsel %vm2291_vm9, %v2296_v5, %v2286_v30 }
 0xda8   :  { %v2306_v37 = vadd.f32 1.0, %v2301_v6 }
 0xda9   :  { %3025 = vmatmul.mubr.msk.f32.gmra.mxu0 %vm2327_vm5, %v2310_v32 }
 0xdaa   :  { %v2311_v1 = vmul.f32 %v2306_v37, %v2181_v36  ;;  %3027 = vmatprep.mubr.msk.f32.mxu0 %vm3184_vm1, %v3183_v35 }
 0xdad   :  { %3028 = vmatmul.mubr.msk.f32.gmra.mxu0 %vm2327_vm5, %v2311_v1 }
 0xe5c   :  { %v2409_v57 = vpop.f32.mrf.mxu0 }
 0xe5d   :  { %v2410_v38 = vadd.f32 %v2544_v51, %v2409_v57 }
 0xe5e   :  { %v3017_v40 = vpop.f32.mrf.mxu0 }
 0xe5f   :  { %v2433_v20 = vadd.f32 %v2410_v38, %v3947_v53 }
 0xe60   :  { %v2414_v12 = vpop.f32.mrf.mxu0 }
 0xe61   :  { %2438 = vst.msk [vmem:[%s4176_s14] sm:$0xff] %vm59_vm0, %v2433_v20  ;;  %v2415_v17 = vadd.f32 %v2544_v51, %v2414_v12 }
 0xe62   :  { %v3020_v23 = vpop.f32.mrf.mxu0 }
 0xe63   :  { %v2434_v35 = vadd.f32 %v2415_v17, %v3955_v8 }
 0xe65   :  { %2439 = vst.msk [vmem:[%s4176_s14 + $0x8] sm:$0xff] %vm59_vm0, %v2434_v35  ;;  %v2419_v39 = vpop.f32.mrf.mxu0 }
 0xe66   :  { %v2420_v43 = vadd.f32 %v2544_v51, %v2419_v39 }
 0xe67   :  { %v3023_v28 = vpop.f32.mrf.mxu0 }
 0xe68   :  { %v2435_v53 = vadd.f32 %v2420_v43, %v3963_v22 }
 0xe69   :  { %v2424_v42 = vpop.f32.mrf.mxu0 }
 0xe6a   :  { %2440 = vst.msk [vmem:[%s4176_s14 + $0x10] sm:$0xff] %vm59_vm0, %v2435_v53  ;;  %v2425_v34 = vadd.f32 %v2544_v51, %v2424_v42 }
 0xe6b   :  { %v3026_v27 = vpop.f32.mrf.mxu0 }
 0xe6c   :  { %v2436_v8 = vadd.f32 %v2425_v34, %v3971_v33 }
 0xe6d   :  { %v2429_v44 = vpop.f32.mrf.mxu0 }
 0xe6e   :  { %2441 = vst.msk [vmem:[%s4176_s14 + $0x18] sm:$0xff] %vm59_vm0, %v2436_v8  ;;  %v2430_v45 = vadd.f32 %v2544_v51, %v2429_v44 }
 0xe6f   :  { %v3029_v50 = vpop.f32.mrf.mxu0 }
 0xe70   :  { %v2437_v22 = vadd.f32 %v2430_v45, %v3979_v10 }
 0xe72   :  { %2442 = vst.msk [vmem:[%s4176_s14 + $0x20] sm:$0xff] %vm59_vm0, %v2437_v22 }

</bundles_post_ra>
